<compile_context>
chip_gen: v7x
topology: tpu7x:2x2x1
jax: 0.10.0
libtpu: 0.0.40
codegen_flags: <defaults>
</compile_context>

<pallas_src>
import jax
import jax.numpy as jnp
from jax.experimental import pallas as pl
from jax.experimental.pallas import tpu as pltpu


# ----------------------------- fused Pallas kernel ---------------------------

def _build_fused_kernel(spatial, n_blocks, no_convs_per_block):
    """Build the fused encoder+head kernel for a static network configuration.

    Ref order:
      x_ref                                   (1, H0, W0*Cin0)
      per conv layer (n_blocks * no_convs_per_block):
          M0, M1, M2   (W*Cin, W*Cout)   banded tap matrices (dy = 0, 1, 2)
          b_row        (1, W*Cout)       bias tiled across W
      per pooling stage (n_blocks - 1):
          P_rows (H/2, H),  P_cols (W*C, (W/2)*C)
      W_head (Wf*Cf, 3L), b_head (1, 3L)
      o_ref (1, 1, 3L)
    """
    n_convs = n_blocks * no_convs_per_block

    def kernel(*refs):
        it = iter(refs)
        x_ref = next(it)
        conv_refs = [tuple(next(it) for _ in range(4)) for _ in range(n_convs)]
        pool_refs = [tuple(next(it) for _ in range(2)) for _ in range(n_blocks - 1)]
        wh_ref = next(it)
        bh_ref = next(it)
        o_ref = next(it)

        x = x_ref[0].astype(jnp.float32)                 # (H, W*C) lane-dense activation
        li = 0
        for blk in range(n_blocks):
            h, _w = spatial[blk]
            if blk != 0:                                  # 2x2 / stride-2 average pool
                pr_ref, pc_ref = pool_refs[blk - 1]
                x = jnp.dot(jnp.dot(pr_ref[...], x, preferred_element_type=jnp.float32),
                            pc_ref[...], preferred_element_type=jnp.float32)
            # Row-shift matrices for the dy = 0 / 2 taps (zero 'same' padding along H).
            # Built once per block (static h), not per conv layer / per row.
            ri = jax.lax.broadcasted_iota(jnp.int32, (h, h), 0)
            ci = jax.lax.broadcasted_iota(jnp.int32, (h, h), 1)
            a_up = (ri == ci + 1).astype(jnp.float32)     # (a_up @ x)[r] = x[r-1], 0 at r=0
            a_dn = (ri == ci - 1).astype(jnp.float32)     # (a_dn @ x)[r] = x[r+1], 0 at r=h-1
            for _ in range(no_convs_per_block):
                m0_ref, m1_ref, m2_ref, b_ref = conv_refs[li]
                li += 1
                x_up = jnp.dot(a_up, x, preferred_element_type=jnp.float32)
                x_dn = jnp.dot(a_dn, x, preferred_element_type=jnp.float32)
                y = (jnp.dot(x_up, m0_ref[...], preferred_element_type=jnp.float32)
                     + jnp.dot(x, m1_ref[...], preferred_element_type=jnp.float32)
                     + jnp.dot(x_dn, m2_ref[...], preferred_element_type=jnp.float32)
                     + b_ref[...])
                x = jnp.maximum(y, 0.0)                   # conv3x3 + bias + ReLU

        # Global spatial mean + 1x1 conv head (the 1/(H*W) is folded into wh_ref).
        rowsum = jnp.sum(x, axis=0, keepdims=True)        # (1, Wf*Cf)
        out = jnp.dot(rowsum, wh_ref[...], preferred_element_type=jnp.float32) + bh_ref[...]
        o_ref[0] = out.astype(o_ref.dtype)

    return kernel


# ----------------------------- wrapper-side operand builders -----------------

def _conv_band_mats(w_hwio, width):
    """HWIO (3,3,Cin,Cout) weights -> [M0, M1, M2], each (width*Cin, width*Cout).

    M_dy[c_src*Cin + i, c_dst*Cout + o] = w[dy, c_src - c_dst + 1, i, o]
    (zero when the dx tap falls outside the 3x3 window -> zero 'same' padding along W).
    """
    _, _, cin, cout = w_hwio.shape
    j = jnp.arange(width * cin)
    k = jnp.arange(width * cout)
    c_src, i_ch = j // cin, j % cin
    c_dst, o_ch = k // cout, k % cout
    dx = c_src[:, None] - c_dst[None, :] + 1
    valid = (dx >= 0) & (dx <= 2)
    dx_c = jnp.clip(dx, 0, 2)
    mats = []
    for dy in range(3):
        m = w_hwio[dy][dx_c, i_ch[:, None], o_ch[None, :]]
        mats.append(jnp.where(valid, m, 0.0).astype(jnp.float32))
    return mats


def _pool_mats(h, w, c):
    """Matrices so that 2x2/stride-2 avg-pool of an (h, w*c) slab is (P_rows @ x) @ P_cols."""
    h2, w2 = h // 2, w // 2
    r = jnp.arange(h2)[:, None]
    col = jnp.arange(h)[None, :]
    p_rows = ((col == 2 * r) | (col == 2 * r + 1)).astype(jnp.float32)         # (h2, h)
    j = jnp.arange(w * c)[:, None]
    k = jnp.arange(w2 * c)[None, :]
    same_ch = (j % c) == (k % c)
    in_win = ((j // c) == 2 * (k // c)) | ((j // c) == 2 * (k // c) + 1)
    p_cols = jnp.where(same_ch & in_win, 0.25, 0.0).astype(jnp.float32)        # (w*c, w2*c)
    return p_rows, p_cols


# ----------------------------- module forward --------------------------------

def axis_aligned_conv_gaussian_forward(x_nchw, conv_params, head_params,
                                       num_filters, no_convs_per_block,
                                       latent_dim, segm_nchw=None):
    """Forward pass. x_nchw: (N, C, H, W). Returns (mu, log_var, p_vnd), each (N, latent_dim)."""
    if segm_nchw is not None:                      # posterior: cat along channel dim
        x_nchw = jnp.concatenate([x_nchw, segm_nchw], axis=1)
    N, C0, H0, W0 = x_nchw.shape
    # NCHW -> NHWC -> lane-dense (N, H, W*C) slab (layout plumbing in the wrapper).
    x2d = jnp.transpose(x_nchw, (0, 2, 3, 1)).reshape(N, H0, W0 * C0)

    n_blocks = len(num_filters)
    # Static spatial size of each block (after the pool that precedes it).
    spatial, h, w = [], H0, W0
    for i in range(n_blocks):
        if i != 0:
            # TODO(synk): AvgPool2d ceil_mode for odd spatial sizes is not implemented.
            assert h % 2 == 0 and w % 2 == 0, "only even spatial sizes supported"
            h, w = h // 2, w // 2
        spatial.append((h, w))

    conv_ops = []
    idx = 0
    for i in range(n_blocks):
        _, wi = spatial[i]
        for _ in range(no_convs_per_block):
            wgt, bias = conv_params[idx]
            idx += 1
            conv_ops += _conv_band_mats(wgt, wi)
            conv_ops.append(jnp.tile(bias.astype(jnp.float32), wi)
                            .reshape(1, wi * wgt.shape[-1]))
    pool_ops = []
    for i in range(1, n_blocks):
        hp, wp = spatial[i - 1]
        p_rows, p_cols = _pool_mats(hp, wp, num_filters[i - 1])
        pool_ops += [p_rows, p_cols]

    w_head, b_head = head_params
    hf, wf = spatial[-1]
    d3 = 3 * latent_dim
    wh = jnp.tile(w_head.astype(jnp.float32), (wf, 1)) / float(hf * wf)        # (wf*Cf, 3L)
    bh = b_head.astype(jnp.float32).reshape(1, d3)

    operands = [x2d] + conv_ops + pool_ops + [wh, bh]

    def _full_spec(arr):
        zeros = (0,) * arr.ndim
        return pl.BlockSpec(arr.shape, lambda n: zeros)

    in_specs = [pl.BlockSpec((1, H0, W0 * C0), lambda n: (n, 0, 0))]
    in_specs += [_full_spec(op) for op in operands[1:]]

    kernel = _build_fused_kernel(tuple(spatial), n_blocks, no_convs_per_block)
    out = pl.pallas_call(
        kernel,
        out_shape=jax.ShapeDtypeStruct((N, 1, d3), jnp.float32),
        grid=(N,),
        in_specs=in_specs,
        out_specs=pl.BlockSpec((1, 1, d3), lambda n: (n, 0, 0)),
        compiler_params=pltpu.CompilerParams(dimension_semantics=("parallel",)),
    )(*operands)

    out = out.reshape(N, d3)
    return (out[:, :latent_dim],
            out[:, latent_dim:2 * latent_dim],
            out[:, 2 * latent_dim:])


# ----------------------------- params ----------------------------------------

def init_params(key, input_channels, num_filters, no_convs_per_block, latent_dim,
                posterior=False):
    """Deterministic (kaiming-style) initialization in NHWC/HWIO layout."""
    in_ch = input_channels + (1 if posterior else 0)
    conv_params = []
    c_in = in_ch
    for nf in num_filters:
        for j in range(no_convs_per_block):
            cin = c_in if j == 0 else nf
            key, k1, k2 = jax.random.split(key, 3)
            fan_in = cin * 9
            wgt = jax.random.normal(k1, (3, 3, cin, nf), jnp.float32) * jnp.sqrt(2.0 / fan_in)
            bias = jax.random.normal(k2, (nf,), jnp.float32) * 0.01
            conv_params.append((wgt, bias))
        c_in = nf
    key, k1, k2 = jax.random.split(key, 3)
    cf = num_filters[-1]
    w_head = jax.random.normal(k1, (cf, 3 * latent_dim), jnp.float32) * jnp.sqrt(2.0 / cf)
    b_head = jax.random.normal(k2, (3 * latent_dim,), jnp.float32)
    return conv_params, (w_head, b_head)


# ----------------------------- pure-JAX reference ----------------------------

def _reference_forward(x_nchw, conv_params, head_params, num_filters,
                       no_convs_per_block, latent_dim):
    with jax.default_matmul_precision("highest"):
        x = jnp.transpose(x_nchw, (0, 2, 3, 1))
        idx = 0
        for i in range(len(num_filters)):
            if i != 0:
                n, h, w, c = x.shape
                x = x.reshape(n, h // 2, 2, w // 2, 2, c).mean(axis=(2, 4))
            for _ in range(no_convs_per_block):
                wk, bk = conv_params[idx]
                idx += 1
                x = jax.lax.conv_general_dilated(
                    x, wk, window_strides=(1, 1), padding="SAME",
                    dimension_numbers=("NHWC", "HWIO", "NHWC")) + bk
                x = jnp.maximum(x, 0.0)
        m = x.mean(axis=(1, 2))
        w_head, b_head = head_params
        out = m @ w_head + b_head
    return (out[:, :latent_dim], out[:, latent_dim:2 * latent_dim], out[:, 2 * latent_dim:])


# ----------------------------- main -------------------------------------------

if __name__ == "__main__":
    # Small config: Prior network (posterior=False, so no segm concat).
    input_channels = 4
    num_filters = [8, 16]
    no_convs_per_block = 2
    latent_dim = 4

    key = jax.random.PRNGKey(0)
    key, kx, kp = jax.random.split(key, 3)
    x = jax.random.normal(kx, (2, input_channels, 16, 16), jnp.float32)   # NCHW, like PyTorch

    conv_params, head_params = init_params(
        kp, input_channels, num_filters, no_convs_per_block, latent_dim, posterior=False)

    fwd = jax.jit(lambda xx, cp, hp: axis_aligned_conv_gaussian_forward(
        xx, cp, hp, num_filters, no_convs_per_block, latent_dim))
    mu, log_var, p_vnd = fwd(x, conv_params, head_params)
    jax.block_until_ready((mu, log_var, p_vnd))

    # Validate against a pure-JAX reference.
    mu_r, lv_r, pv_r = _reference_forward(
        x, conv_params, head_params, num_filters, no_convs_per_block, latent_dim)
    assert mu.shape == (2, latent_dim) and log_var.shape == (2, latent_dim) \
        and p_vnd.shape == (2, latent_dim)
    assert jnp.allclose(mu, mu_r, atol=1e-3, rtol=1e-3)
    assert jnp.allclose(log_var, lv_r, atol=1e-3, rtol=1e-3)
    assert jnp.allclose(p_vnd, pv_r, atol=1e-3, rtol=1e-3)

    print("KERNEL_OK")
</pallas_src>

<mosaic_0001>
module attributes {stable_mosaic.version = 11 : i64} {
  func.func @kernel(%arg0: i32, %arg1: memref<1x16x64xf32, #tpu.memory_space<vmem>>, %arg2: memref<64x128xf32, #tpu.memory_space<vmem>>, %arg3: memref<64x128xf32, #tpu.memory_space<vmem>>, %arg4: memref<64x128xf32, #tpu.memory_space<vmem>>, %arg5: memref<1x128xf32, #tpu.memory_space<vmem>>, %arg6: memref<128x128xf32, #tpu.memory_space<vmem>>, %arg7: memref<128x128xf32, #tpu.memory_space<vmem>>, %arg8: memref<128x128xf32, #tpu.memory_space<vmem>>, %arg9: memref<1x128xf32, #tpu.memory_space<vmem>>, %arg10: memref<64x128xf32, #tpu.memory_space<vmem>>, %arg11: memref<64x128xf32, #tpu.memory_space<vmem>>, %arg12: memref<64x128xf32, #tpu.memory_space<vmem>>, %arg13: memref<1x128xf32, #tpu.memory_space<vmem>>, %arg14: memref<128x128xf32, #tpu.memory_space<vmem>>, %arg15: memref<128x128xf32, #tpu.memory_space<vmem>>, %arg16: memref<128x128xf32, #tpu.memory_space<vmem>>, %arg17: memref<1x128xf32, #tpu.memory_space<vmem>>, %arg18: memref<8x16xf32, #tpu.memory_space<vmem>>, %arg19: memref<128x64xf32, #tpu.memory_space<vmem>>, %arg20: memref<128x12xf32, #tpu.memory_space<vmem>>, %arg21: memref<1x12xf32, #tpu.memory_space<vmem>>, %arg22: memref<1x1x12xf32, #tpu.memory_space<vmem>>) attributes {dimension_semantics = [#tpu.dimension_semantics<parallel>], iteration_bounds = array<i64: 2>, scalar_prefetch = 0 : i64, scratch_operands = 0 : i64, tpu.core_type = #tpu.core_type<tc>, window_params = [{transform_indices = @transform_0, window_bounds = array<i64: 1, 16, 64>}, {pipeline_mode = #tpu.pipeline_mode<synchronous>, transform_indices = @transform_1, window_bounds = array<i64: 64, 128>}, {pipeline_mode = #tpu.pipeline_mode<synchronous>, transform_indices = @transform_2, window_bounds = array<i64: 64, 128>}, {pipeline_mode = #tpu.pipeline_mode<synchronous>, transform_indices = @transform_3, window_bounds = array<i64: 64, 128>}, {pipeline_mode = #tpu.pipeline_mode<synchronous>, transform_indices = @transform_4, window_bounds = array<i64: 1, 128>}, {pipeline_mode = #tpu.pipeline_mode<synchronous>, transform_indices = @transform_5, window_bounds = array<i64: 128, 128>}, {pipeline_mode = #tpu.pipeline_mode<synchronous>, transform_indices = @transform_6, window_bounds = array<i64: 128, 128>}, {pipeline_mode = #tpu.pipeline_mode<synchronous>, transform_indices = @transform_7, window_bounds = array<i64: 128, 128>}, {pipeline_mode = #tpu.pipeline_mode<synchronous>, transform_indices = @transform_8, window_bounds = array<i64: 1, 128>}, {pipeline_mode = #tpu.pipeline_mode<synchronous>, transform_indices = @transform_9, window_bounds = array<i64: 64, 128>}, {pipeline_mode = #tpu.pipeline_mode<synchronous>, transform_indices = @transform_10, window_bounds = array<i64: 64, 128>}, {pipeline_mode = #tpu.pipeline_mode<synchronous>, transform_indices = @transform_11, window_bounds = array<i64: 64, 128>}, {pipeline_mode = #tpu.pipeline_mode<synchronous>, transform_indices = @transform_12, window_bounds = array<i64: 1, 128>}, {pipeline_mode = #tpu.pipeline_mode<synchronous>, transform_indices = @transform_13, window_bounds = array<i64: 128, 128>}, {pipeline_mode = #tpu.pipeline_mode<synchronous>, transform_indices = @transform_14, window_bounds = array<i64: 128, 128>}, {pipeline_mode = #tpu.pipeline_mode<synchronous>, transform_indices = @transform_15, window_bounds = array<i64: 128, 128>}, {pipeline_mode = #tpu.pipeline_mode<synchronous>, transform_indices = @transform_16, window_bounds = array<i64: 1, 128>}, {pipeline_mode = #tpu.pipeline_mode<synchronous>, transform_indices = @transform_17, window_bounds = array<i64: 8, 16>}, {pipeline_mode = #tpu.pipeline_mode<synchronous>, transform_indices = @transform_18, window_bounds = array<i64: 128, 64>}, {pipeline_mode = #tpu.pipeline_mode<synchronous>, transform_indices = @transform_19, window_bounds = array<i64: 128, 12>}, {pipeline_mode = #tpu.pipeline_mode<synchronous>, transform_indices = @transform_20, window_bounds = array<i64: 1, 12>}, {transform_indices = @transform_21, window_bounds = array<i64: 1, 1, 12>}]} {
    %c0 = arith.constant 0 : index
    %c0_0 = arith.constant 0 : index
    %c0_1 = arith.constant 0 : index
    %0 = vector.load %arg1[%c0, %c0_0, %c0_1] : memref<1x16x64xf32, #tpu.memory_space<vmem>>, vector<1x16x64xf32>
    %1 = vector.shape_cast %0 : vector<1x16x64xf32> to vector<16x64xf32>
    %2 = tpu.iota {dimensions = array<i32: 0>} : vector<16x16xi32>
    %3 = tpu.iota {dimensions = array<i32: 1>} : vector<16x16xi32>
    %c1_i32 = arith.constant 1 : i32
    %4 = vector.broadcast %c1_i32 : i32 to vector<16x16xi32>
    %5 = arith.addi %3, %4 : vector<16x16xi32>
    %6 = arith.cmpi eq, %2, %5 : vector<16x16xi32>
    %7 = arith.extui %6 : vector<16x16xi1> to vector<16x16xi32>
    %8 = arith.sitofp %7 : vector<16x16xi32> to vector<16x16xf32>
    %c1_i32_2 = arith.constant 1 : i32
    %9 = vector.broadcast %c1_i32_2 : i32 to vector<16x16xi32>
    %10 = arith.subi %3, %9 : vector<16x16xi32>
    %11 = arith.cmpi eq, %2, %10 : vector<16x16xi32>
    %12 = arith.extui %11 : vector<16x16xi1> to vector<16x16xi32>
    %13 = arith.sitofp %12 : vector<16x16xi32> to vector<16x16xf32>
    %cst = arith.constant dense<0.000000e+00> : vector<16x64xf32>
    %14 = tpu.matmul %8, %1, %cst {dimension_numbers = #tpu.dot_dimension_numbers<[1], [0], [0], [1], [0, 0, 1, 1], [], []>} : vector<16x16xf32>, vector<16x64xf32>, vector<16x64xf32> -> vector<16x64xf32>
    %cst_3 = arith.constant dense<0.000000e+00> : vector<16x64xf32>
    %15 = tpu.matmul %13, %1, %cst_3 {dimension_numbers = #tpu.dot_dimension_numbers<[1], [0], [0], [1], [0, 0, 1, 1], [], []>} : vector<16x16xf32>, vector<16x64xf32>, vector<16x64xf32> -> vector<16x64xf32>
    %c0_4 = arith.constant 0 : index
    %c0_5 = arith.constant 0 : index
    %16 = vector.load %arg2[%c0_4, %c0_5] : memref<64x128xf32, #tpu.memory_space<vmem>>, vector<64x128xf32>
    %cst_6 = arith.constant dense<0.000000e+00> : vector<16x128xf32>
    %17 = tpu.matmul %14, %16, %cst_6 {dimension_numbers = #tpu.dot_dimension_numbers<[1], [0], [0], [1], [0, 0, 1, 1], [], []>} : vector<16x64xf32>, vector<64x128xf32>, vector<16x128xf32> -> vector<16x128xf32>
    %c0_7 = arith.constant 0 : index
    %c0_8 = arith.constant 0 : index
    %18 = vector.load %arg3[%c0_7, %c0_8] : memref<64x128xf32, #tpu.memory_space<vmem>>, vector<64x128xf32>
    %cst_9 = arith.constant dense<0.000000e+00> : vector<16x128xf32>
    %19 = tpu.matmul %1, %18, %cst_9 {dimension_numbers = #tpu.dot_dimension_numbers<[1], [0], [0], [1], [0, 0, 1, 1], [], []>} : vector<16x64xf32>, vector<64x128xf32>, vector<16x128xf32> -> vector<16x128xf32>
    %20 = arith.addf %17, %19 : vector<16x128xf32>
    %c0_10 = arith.constant 0 : index
    %c0_11 = arith.constant 0 : index
    %21 = vector.load %arg4[%c0_10, %c0_11] : memref<64x128xf32, #tpu.memory_space<vmem>>, vector<64x128xf32>
    %cst_12 = arith.constant dense<0.000000e+00> : vector<16x128xf32>
    %22 = tpu.matmul %15, %21, %cst_12 {dimension_numbers = #tpu.dot_dimension_numbers<[1], [0], [0], [1], [0, 0, 1, 1], [], []>} : vector<16x64xf32>, vector<64x128xf32>, vector<16x128xf32> -> vector<16x128xf32>
    %23 = arith.addf %20, %22 : vector<16x128xf32>
    %c0_13 = arith.constant 0 : index
    %c0_14 = arith.constant 0 : index
    %24 = vector.load %arg5[%c0_13, %c0_14] : memref<1x128xf32, #tpu.memory_space<vmem>>, vector<1x128xf32>
    %25 = vector.broadcast %24 : vector<1x128xf32> to vector<16x128xf32>
    %26 = arith.addf %23, %25 : vector<16x128xf32>
    %cst_15 = arith.constant 0.000000e+00 : f32
    %27 = vector.broadcast %cst_15 : f32 to vector<16x128xf32>
    %28 = arith.maximumf %26, %27 : vector<16x128xf32>
    %cst_16 = arith.constant dense<0.000000e+00> : vector<16x128xf32>
    %29 = tpu.matmul %8, %28, %cst_16 {dimension_numbers = #tpu.dot_dimension_numbers<[1], [0], [0], [1], [0, 0, 1, 1], [], []>} : vector<16x16xf32>, vector<16x128xf32>, vector<16x128xf32> -> vector<16x128xf32>
    %cst_17 = arith.constant dense<0.000000e+00> : vector<16x128xf32>
    %30 = tpu.matmul %13, %28, %cst_17 {dimension_numbers = #tpu.dot_dimension_numbers<[1], [0], [0], [1], [0, 0, 1, 1], [], []>} : vector<16x16xf32>, vector<16x128xf32>, vector<16x128xf32> -> vector<16x128xf32>
    %c0_18 = arith.constant 0 : index
    %c0_19 = arith.constant 0 : index
    %31 = vector.load %arg6[%c0_18, %c0_19] : memref<128x128xf32, #tpu.memory_space<vmem>>, vector<128x128xf32>
    %cst_20 = arith.constant dense<0.000000e+00> : vector<16x128xf32>
    %32 = tpu.matmul %29, %31, %cst_20 {dimension_numbers = #tpu.dot_dimension_numbers<[1], [0], [0], [1], [0, 0, 1, 1], [], []>} : vector<16x128xf32>, vector<128x128xf32>, vector<16x128xf32> -> vector<16x128xf32>
    %c0_21 = arith.constant 0 : index
    %c0_22 = arith.constant 0 : index
    %33 = vector.load %arg7[%c0_21, %c0_22] : memref<128x128xf32, #tpu.memory_space<vmem>>, vector<128x128xf32>
    %cst_23 = arith.constant dense<0.000000e+00> : vector<16x128xf32>
    %34 = tpu.matmul %28, %33, %cst_23 {dimension_numbers = #tpu.dot_dimension_numbers<[1], [0], [0], [1], [0, 0, 1, 1], [], []>} : vector<16x128xf32>, vector<128x128xf32>, vector<16x128xf32> -> vector<16x128xf32>
    %35 = arith.addf %32, %34 : vector<16x128xf32>
    %c0_24 = arith.constant 0 : index
    %c0_25 = arith.constant 0 : index
    %36 = vector.load %arg8[%c0_24, %c0_25] : memref<128x128xf32, #tpu.memory_space<vmem>>, vector<128x128xf32>
    %cst_26 = arith.constant dense<0.000000e+00> : vector<16x128xf32>
    %37 = tpu.matmul %30, %36, %cst_26 {dimension_numbers = #tpu.dot_dimension_numbers<[1], [0], [0], [1], [0, 0, 1, 1], [], []>} : vector<16x128xf32>, vector<128x128xf32>, vector<16x128xf32> -> vector<16x128xf32>
    %38 = arith.addf %35, %37 : vector<16x128xf32>
    %c0_27 = arith.constant 0 : index
    %c0_28 = arith.constant 0 : index
    %39 = vector.load %arg9[%c0_27, %c0_28] : memref<1x128xf32, #tpu.memory_space<vmem>>, vector<1x128xf32>
    %40 = vector.broadcast %39 : vector<1x128xf32> to vector<16x128xf32>
    %41 = arith.addf %38, %40 : vector<16x128xf32>
    %cst_29 = arith.constant 0.000000e+00 : f32
    %42 = vector.broadcast %cst_29 : f32 to vector<16x128xf32>
    %43 = arith.maximumf %41, %42 : vector<16x128xf32>
    %c0_30 = arith.constant 0 : index
    %c0_31 = arith.constant 0 : index
    %44 = vector.load %arg18[%c0_30, %c0_31] : memref<8x16xf32, #tpu.memory_space<vmem>>, vector<8x16xf32>
    %cst_32 = arith.constant dense<0.000000e+00> : vector<8x128xf32>
    %45 = tpu.matmul %44, %43, %cst_32 {dimension_numbers = #tpu.dot_dimension_numbers<[1], [0], [0], [1], [0, 0, 1, 1], [], []>} : vector<8x16xf32>, vector<16x128xf32>, vector<8x128xf32> -> vector<8x128xf32>
    %c0_33 = arith.constant 0 : index
    %c0_34 = arith.constant 0 : index
    %46 = vector.load %arg19[%c0_33, %c0_34] : memref<128x64xf32, #tpu.memory_space<vmem>>, vector<128x64xf32>
    %cst_35 = arith.constant dense<0.000000e+00> : vector<8x64xf32>
    %47 = tpu.matmul %45, %46, %cst_35 {dimension_numbers = #tpu.dot_dimension_numbers<[1], [0], [0], [1], [0, 0, 1, 1], [], []>} : vector<8x128xf32>, vector<128x64xf32>, vector<8x64xf32> -> vector<8x64xf32>
    %48 = tpu.iota {dimensions = array<i32: 0>} : vector<8x8xi32>
    %49 = tpu.iota {dimensions = array<i32: 1>} : vector<8x8xi32>
    %c1_i32_36 = arith.constant 1 : i32
    %50 = vector.broadcast %c1_i32_36 : i32 to vector<8x8xi32>
    %51 = arith.addi %49, %50 : vector<8x8xi32>
    %52 = arith.cmpi eq, %48, %51 : vector<8x8xi32>
    %53 = arith.extui %52 : vector<8x8xi1> to vector<8x8xi32>
    %54 = arith.sitofp %53 : vector<8x8xi32> to vector<8x8xf32>
    %c1_i32_37 = arith.constant 1 : i32
    %55 = vector.broadcast %c1_i32_37 : i32 to vector<8x8xi32>
    %56 = arith.subi %49, %55 : vector<8x8xi32>
    %57 = arith.cmpi eq, %48, %56 : vector<8x8xi32>
    %58 = arith.extui %57 : vector<8x8xi1> to vector<8x8xi32>
    %59 = arith.sitofp %58 : vector<8x8xi32> to vector<8x8xf32>
    %cst_38 = arith.constant dense<0.000000e+00> : vector<8x64xf32>
    %60 = tpu.matmul %54, %47, %cst_38 {dimension_numbers = #tpu.dot_dimension_numbers<[1], [0], [0], [1], [0, 0, 1, 1], [], []>} : vector<8x8xf32>, vector<8x64xf32>, vector<8x64xf32> -> vector<8x64xf32>
    %cst_39 = arith.constant dense<0.000000e+00> : vector<8x64xf32>
    %61 = tpu.matmul %59, %47, %cst_39 {dimension_numbers = #tpu.dot_dimension_numbers<[1], [0], [0], [1], [0, 0, 1, 1], [], []>} : vector<8x8xf32>, vector<8x64xf32>, vector<8x64xf32> -> vector<8x64xf32>
    %c0_40 = arith.constant 0 : index
    %c0_41 = arith.constant 0 : index
    %62 = vector.load %arg10[%c0_40, %c0_41] : memref<64x128xf32, #tpu.memory_space<vmem>>, vector<64x128xf32>
    %cst_42 = arith.constant dense<0.000000e+00> : vector<8x128xf32>
    %63 = tpu.matmul %60, %62, %cst_42 {dimension_numbers = #tpu.dot_dimension_numbers<[1], [0], [0], [1], [0, 0, 1, 1], [], []>} : vector<8x64xf32>, vector<64x128xf32>, vector<8x128xf32> -> vector<8x128xf32>
    %c0_43 = arith.constant 0 : index
    %c0_44 = arith.constant 0 : index
    %64 = vector.load %arg11[%c0_43, %c0_44] : memref<64x128xf32, #tpu.memory_space<vmem>>, vector<64x128xf32>
    %cst_45 = arith.constant dense<0.000000e+00> : vector<8x128xf32>
    %65 = tpu.matmul %47, %64, %cst_45 {dimension_numbers = #tpu.dot_dimension_numbers<[1], [0], [0], [1], [0, 0, 1, 1], [], []>} : vector<8x64xf32>, vector<64x128xf32>, vector<8x128xf32> -> vector<8x128xf32>
    %66 = arith.addf %63, %65 : vector<8x128xf32>
    %c0_46 = arith.constant 0 : index
    %c0_47 = arith.constant 0 : index
    %67 = vector.load %arg12[%c0_46, %c0_47] : memref<64x128xf32, #tpu.memory_space<vmem>>, vector<64x128xf32>
    %cst_48 = arith.constant dense<0.000000e+00> : vector<8x128xf32>
    %68 = tpu.matmul %61, %67, %cst_48 {dimension_numbers = #tpu.dot_dimension_numbers<[1], [0], [0], [1], [0, 0, 1, 1], [], []>} : vector<8x64xf32>, vector<64x128xf32>, vector<8x128xf32> -> vector<8x128xf32>
    %69 = arith.addf %66, %68 : vector<8x128xf32>
    %c0_49 = arith.constant 0 : index
    %c0_50 = arith.constant 0 : index
    %70 = vector.load %arg13[%c0_49, %c0_50] : memref<1x128xf32, #tpu.memory_space<vmem>>, vector<1x128xf32>
    %71 = vector.broadcast %70 : vector<1x128xf32> to vector<8x128xf32>
    %72 = arith.addf %69, %71 : vector<8x128xf32>
    %cst_51 = arith.constant 0.000000e+00 : f32
    %73 = vector.broadcast %cst_51 : f32 to vector<8x128xf32>
    %74 = arith.maximumf %72, %73 : vector<8x128xf32>
    %cst_52 = arith.constant dense<0.000000e+00> : vector<8x128xf32>
    %75 = tpu.matmul %54, %74, %cst_52 {dimension_numbers = #tpu.dot_dimension_numbers<[1], [0], [0], [1], [0, 0, 1, 1], [], []>} : vector<8x8xf32>, vector<8x128xf32>, vector<8x128xf32> -> vector<8x128xf32>
    %cst_53 = arith.constant dense<0.000000e+00> : vector<8x128xf32>
    %76 = tpu.matmul %59, %74, %cst_53 {dimension_numbers = #tpu.dot_dimension_numbers<[1], [0], [0], [1], [0, 0, 1, 1], [], []>} : vector<8x8xf32>, vector<8x128xf32>, vector<8x128xf32> -> vector<8x128xf32>
    %c0_54 = arith.constant 0 : index
    %c0_55 = arith.constant 0 : index
    %77 = vector.load %arg14[%c0_54, %c0_55] : memref<128x128xf32, #tpu.memory_space<vmem>>, vector<128x128xf32>
    %cst_56 = arith.constant dense<0.000000e+00> : vector<8x128xf32>
    %78 = tpu.matmul %75, %77, %cst_56 {dimension_numbers = #tpu.dot_dimension_numbers<[1], [0], [0], [1], [0, 0, 1, 1], [], []>} : vector<8x128xf32>, vector<128x128xf32>, vector<8x128xf32> -> vector<8x128xf32>
    %c0_57 = arith.constant 0 : index
    %c0_58 = arith.constant 0 : index
    %79 = vector.load %arg15[%c0_57, %c0_58] : memref<128x128xf32, #tpu.memory_space<vmem>>, vector<128x128xf32>
    %cst_59 = arith.constant dense<0.000000e+00> : vector<8x128xf32>
    %80 = tpu.matmul %74, %79, %cst_59 {dimension_numbers = #tpu.dot_dimension_numbers<[1], [0], [0], [1], [0, 0, 1, 1], [], []>} : vector<8x128xf32>, vector<128x128xf32>, vector<8x128xf32> -> vector<8x128xf32>
    %81 = arith.addf %78, %80 : vector<8x128xf32>
    %c0_60 = arith.constant 0 : index
    %c0_61 = arith.constant 0 : index
    %82 = vector.load %arg16[%c0_60, %c0_61] : memref<128x128xf32, #tpu.memory_space<vmem>>, vector<128x128xf32>
    %cst_62 = arith.constant dense<0.000000e+00> : vector<8x128xf32>
    %83 = tpu.matmul %76, %82, %cst_62 {dimension_numbers = #tpu.dot_dimension_numbers<[1], [0], [0], [1], [0, 0, 1, 1], [], []>} : vector<8x128xf32>, vector<128x128xf32>, vector<8x128xf32> -> vector<8x128xf32>
    %84 = arith.addf %81, %83 : vector<8x128xf32>
    %c0_63 = arith.constant 0 : index
    %c0_64 = arith.constant 0 : index
    %85 = vector.load %arg17[%c0_63, %c0_64] : memref<1x128xf32, #tpu.memory_space<vmem>>, vector<1x128xf32>
    %86 = vector.broadcast %85 : vector<1x128xf32> to vector<8x128xf32>
    %87 = arith.addf %84, %86 : vector<8x128xf32>
    %cst_65 = arith.constant 0.000000e+00 : f32
    %88 = vector.broadcast %cst_65 : f32 to vector<8x128xf32>
    %89 = arith.maximumf %87, %88 : vector<8x128xf32>
    %cst_66 = arith.constant dense<0.000000e+00> : vector<128xf32>
    %90 = vector.multi_reduction <add>, %89, %cst_66 [0] : vector<8x128xf32> to vector<128xf32>
    %91 = vector.shape_cast %90 : vector<128xf32> to vector<1x128xf32>
    %c0_67 = arith.constant 0 : index
    %c0_68 = arith.constant 0 : index
    %92 = vector.load %arg20[%c0_67, %c0_68] : memref<128x12xf32, #tpu.memory_space<vmem>>, vector<128x12xf32>
    %cst_69 = arith.constant dense<0.000000e+00> : vector<1x12xf32>
    %93 = tpu.matmul %91, %92, %cst_69 {dimension_numbers = #tpu.dot_dimension_numbers<[1], [0], [0], [1], [0, 0, 1, 1], [], []>} : vector<1x128xf32>, vector<128x12xf32>, vector<1x12xf32> -> vector<1x12xf32>
    %c0_70 = arith.constant 0 : index
    %c0_71 = arith.constant 0 : index
    %94 = vector.load %arg21[%c0_70, %c0_71] : memref<1x12xf32, #tpu.memory_space<vmem>>, vector<1x12xf32>
    %95 = arith.addf %93, %94 : vector<1x12xf32>
    %c0_72 = arith.constant 0 : index
    %c0_73 = arith.constant 0 : index
    %c0_74 = arith.constant 0 : index
    %96 = vector.load %arg22[%c0_72, %c0_73, %c0_74] : memref<1x1x12xf32, #tpu.memory_space<vmem>>, vector<1x1x12xf32>
    %97 = vector.shape_cast %96 : vector<1x1x12xf32> to vector<1x12xf32>
    %98 = vector.shape_cast %95 : vector<1x12xf32> to vector<1x1x12xf32>
    tpu.vector_store %arg22[%c0_72, %c0_73, %c0_74], %98 {strides = array<i32>} : memref<1x1x12xf32, #tpu.memory_space<vmem>>, vector<1x1x12xf32>,
    return
  }
  func.func @transform_0(%arg0: i32) -> (i32, i32, i32) {
    %c0_i32 = arith.constant 0 : i32
    %c0_i32_0 = arith.constant 0 : i32
    %c0_i32_1 = arith.constant 0 : i32
    return %arg0, %c0_i32, %c0_i32_0 : i32, i32, i32
  }
  func.func @transform_1(%arg0: i32) -> (i32, i32) {
    %c0_i32 = arith.constant 0 : i32
    %c0_i32_0 = arith.constant 0 : i32
    %c0_i32_1 = arith.constant 0 : i32
    return %c0_i32, %c0_i32_0 : i32, i32
  }
  func.func @transform_2(%arg0: i32) -> (i32, i32) {
    %c0_i32 = arith.constant 0 : i32
    %c0_i32_0 = arith.constant 0 : i32
    %c0_i32_1 = arith.constant 0 : i32
    return %c0_i32, %c0_i32_0 : i32, i32
  }
  func.func @transform_3(%arg0: i32) -> (i32, i32) {
    %c0_i32 = arith.constant 0 : i32
    %c0_i32_0 = arith.constant 0 : i32
    %c0_i32_1 = arith.constant 0 : i32
    return %c0_i32, %c0_i32_0 : i32, i32
  }
  func.func @transform_4(%arg0: i32) -> (i32, i32) {
    %c0_i32 = arith.constant 0 : i32
    %c0_i32_0 = arith.constant 0 : i32
    %c0_i32_1 = arith.constant 0 : i32
    return %c0_i32, %c0_i32_0 : i32, i32
  }
  func.func @transform_5(%arg0: i32) -> (i32, i32) {
    %c0_i32 = arith.constant 0 : i32
    %c0_i32_0 = arith.constant 0 : i32
    %c0_i32_1 = arith.constant 0 : i32
    return %c0_i32, %c0_i32_0 : i32, i32
  }
  func.func @transform_6(%arg0: i32) -> (i32, i32) {
    %c0_i32 = arith.constant 0 : i32
    %c0_i32_0 = arith.constant 0 : i32
    %c0_i32_1 = arith.constant 0 : i32
    return %c0_i32, %c0_i32_0 : i32, i32
  }
  func.func @transform_7(%arg0: i32) -> (i32, i32) {
    %c0_i32 = arith.constant 0 : i32
    %c0_i32_0 = arith.constant 0 : i32
    %c0_i32_1 = arith.constant 0 : i32
    return %c0_i32, %c0_i32_0 : i32, i32
  }
  func.func @transform_8(%arg0: i32) -> (i32, i32) {
    %c0_i32 = arith.constant 0 : i32
    %c0_i32_0 = arith.constant 0 : i32
    %c0_i32_1 = arith.constant 0 : i32
    return %c0_i32, %c0_i32_0 : i32, i32
  }
  func.func @transform_9(%arg0: i32) -> (i32, i32) {
    %c0_i32 = arith.constant 0 : i32
    %c0_i32_0 = arith.constant 0 : i32
    %c0_i32_1 = arith.constant 0 : i32
    return %c0_i32, %c0_i32_0 : i32, i32
  }
  func.func @transform_10(%arg0: i32) -> (i32, i32) {
    %c0_i32 = arith.constant 0 : i32
    %c0_i32_0 = arith.constant 0 : i32
    %c0_i32_1 = arith.constant 0 : i32
    return %c0_i32, %c0_i32_0 : i32, i32
  }
  func.func @transform_11(%arg0: i32) -> (i32, i32) {
    %c0_i32 = arith.constant 0 : i32
    %c0_i32_0 = arith.constant 0 : i32
    %c0_i32_1 = arith.constant 0 : i32
    return %c0_i32, %c0_i32_0 : i32, i32
  }
  func.func @transform_12(%arg0: i32) -> (i32, i32) {
    %c0_i32 = arith.constant 0 : i32
    %c0_i32_0 = arith.constant 0 : i32
    %c0_i32_1 = arith.constant 0 : i32
    return %c0_i32, %c0_i32_0 : i32, i32
  }
  func.func @transform_13(%arg0: i32) -> (i32, i32) {
    %c0_i32 = arith.constant 0 : i32
    %c0_i32_0 = arith.constant 0 : i32
    %c0_i32_1 = arith.constant 0 : i32
    return %c0_i32, %c0_i32_0 : i32, i32
  }
  func.func @transform_14(%arg0: i32) -> (i32, i32) {
    %c0_i32 = arith.constant 0 : i32
    %c0_i32_0 = arith.constant 0 : i32
    %c0_i32_1 = arith.constant 0 : i32
    return %c0_i32, %c0_i32_0 : i32, i32
  }
  func.func @transform_15(%arg0: i32) -> (i32, i32) {
    %c0_i32 = arith.constant 0 : i32
    %c0_i32_0 = arith.constant 0 : i32
    %c0_i32_1 = arith.constant 0 : i32
    return %c0_i32, %c0_i32_0 : i32, i32
  }
  func.func @transform_16(%arg0: i32) -> (i32, i32) {
    %c0_i32 = arith.constant 0 : i32
    %c0_i32_0 = arith.constant 0 : i32
    %c0_i32_1 = arith.constant 0 : i32
    return %c0_i32, %c0_i32_0 : i32, i32
  }
  func.func @transform_17(%arg0: i32) -> (i32, i32) {
    %c0_i32 = arith.constant 0 : i32
    %c0_i32_0 = arith.constant 0 : i32
    %c0_i32_1 = arith.constant 0 : i32
    return %c0_i32, %c0_i32_0 : i32, i32
  }
  func.func @transform_18(%arg0: i32) -> (i32, i32) {
    %c0_i32 = arith.constant 0 : i32
    %c0_i32_0 = arith.constant 0 : i32
    %c0_i32_1 = arith.constant 0 : i32
    return %c0_i32, %c0_i32_0 : i32, i32
  }
  func.func @transform_19(%arg0: i32) -> (i32, i32) {
    %c0_i32 = arith.constant 0 : i32
    %c0_i32_0 = arith.constant 0 : i32
    %c0_i32_1 = arith.constant 0 : i32
    return %c0_i32, %c0_i32_0 : i32, i32
  }
  func.func @transform_20(%arg0: i32) -> (i32, i32) {
    %c0_i32 = arith.constant 0 : i32
    %c0_i32_0 = arith.constant 0 : i32
    %c0_i32_1 = arith.constant 0 : i32
    return %c0_i32, %c0_i32_0 : i32, i32
  }
  func.func @transform_21(%arg0: i32) -> (i32, i32, i32) {
    %c0_i32 = arith.constant 0 : i32
    %c0_i32_0 = arith.constant 0 : i32
    %c0_i32_1 = arith.constant 0 : i32
    return %arg0, %c0_i32, %c0_i32_0 : i32, i32, i32
  }
}

</mosaic_0001>

<bundles_post_ra>
// kernel: tile.28
= control target key start
LH: loop header
LB: loop body
LE: loop exit
PB: predicated region body
PF: predicated region fallthrough
CT: control target
= control target key end

     0   :  { %s28_s0 = inlined_call_operand.vmem [shape: f32[8], index: 0, kind: input, shape index: {}]   ;;  %s29_s1 = inlined_call_operand.vmem [shape: f32[16,8], index: 1, kind: output, shape index: {}]  }
   0x1   :  { %v4_v0 = vld [vmem:[%s28_s0] ss:$0 sm:$0xff] }
   0x2   :  { %5 = vst [vmem:[%s29_s1] sm:$0xff] %v4_v0  ;;  %8 = vst [vmem:[%s29_s1 + $0x8] sm:$0xff] %v4_v0 }

// kernel: tile.29
= control target key start
LH: loop header
LB: loop body
LE: loop exit
PB: predicated region body
PF: predicated region fallthrough
CT: control target
= control target key end

     0   :  { %s131_s10 = smov 120   ;;  %s132_s11 = smov 104   ;;  %vm3_vm0 = vcmask 64512   ;;  %vm9_vm1 = vcmask 1048512   ;;  %vm15_vm2 = vcmask 982912   ;;  %vm21_vm3 = vcmask 917312   ;;  %s207_s0 = inlined_call_operand.vmem [shape: f32[16,8], index: 0, kind: input, shape index: {}]   ;;  %s208_s1 = inlined_call_operand.vmem [shape: f32[1,128], index: 1, kind: output, shape index: {}]  }
   0x1   :  { %v101_v0 = vld [vmem:[%s207_s0 + $0xf] sm:$0x1]   ;;  %v103_v1 = vld [vmem:[%s207_s0 + $0xd] sm:$0x1]   ;;  %v102_v2 = vld [vmem:[%s207_s0 + $0xe] sm:$0x1]  }
   0x2   :  { %7 = vrot.lane.b32.xlu0 %v101_v0, %s131_s10  ;;  %19 = vrot.lane.b32.xlu1 %v103_v1, %s132_s11  ;;  %v104_v3 = vld [vmem:[%s207_s0 + $0xc] sm:$0x1]   ;;  %s133_s16 = smov 112   ;;  %s134_s17 = smov 96   ;;  %v105_v4 = vld [vmem:[%s207_s0 + $0xb] sm:$0x1]  }
   0x3   :  { %v106_v5 = vld [vmem:[%s207_s0 + $0xa] sm:$0x1]   ;;  %v2_v6 = vld [vmem:[%s207_s0] sm:$0x1]   ;;  %s135_s24 = smov 88   ;;  %s136_s25 = smov 80  }
   0x4   :  { %4 = vst.msk [vmem:[#allocation0] sm:$0x1] %vm3_vm0, %v2_v6   ;;  %v107_v7 = vld [vmem:[%s207_s0 + $0x9] sm:$0x1]   ;;  %v108_v8 = vld [vmem:[%s207_s0 + $0x8] sm:$0x1]  }
   0x5   :  { %s137_s30 = smov 72   ;;  %s138_s2 = smov 64   ;;  %v109_v9 = vld [vmem:[%s207_s0 + $0x7] sm:$0x1]   ;;  %v110_v10 = vld [vmem:[%s207_s0 + $0x6] sm:$0x1]  }
   0x6   :  { %13 = vrot.lane.b32.xlu0 %v102_v2, %s133_s16  ;;  %25 = vrot.lane.b32.xlu1 %v104_v3, %s134_s17  ;;  %s139_s7 = smov 56   ;;  %s140_s8 = smov 48   ;;  %v111_v11 = vld [vmem:[%s207_s0 + $0x5] sm:$0x1]   ;;  %v112_v12 = vld [vmem:[%s207_s0 + $0x4] sm:$0x1]  }
   0x7   :  { %s141_s13 = smov 40   ;;  %s142_s14 = smov 32   ;;  %v113_v13 = vld [vmem:[%s207_s0 + $0x3] sm:$0x1]   ;;  %v114_v14 = vld [vmem:[%s207_s0 + $0x2] sm:$0x1]  }
   0x8   :  { %s143_s19 = smov 24   ;;  %s144_s20 = smov 16   ;;  %v115_v15 = vld [vmem:[%s207_s0 + $0x1] sm:$0x1]   ;;  %vm27_vm4 = vcmask 851712   ;;  %vm33_vm5 = vcmask 786112  }
   0x9   :  { %s145_s0 = smov 8   ;;  %vm39_vm6 = vcmask 720512   ;;  %vm45_vm7 = vcmask 654912   ;;  %vm51_vm8 = vcmask 589312   ;;  %vm57_vm9 = vcmask 523712  }
   0xa   :  { %31 = vrot.lane.b32.xlu0 %v105_v4, %s135_s24  ;;  %37 = vrot.lane.b32.xlu1 %v106_v5, %s136_s25  ;;  %vm63_vm10 = vcmask 458112   ;;  %vm69_vm11 = vcmask 392512   ;;  %vm75_vm12 = vcmask 326912   ;;  %vm81_vm13 = vcmask 261312  }
   0xb   :  { %vm87_vm14 = vcmask 195712   ;;  %vm93_vm15 = vcmask 130112  }
   0xe   :  { %43 = vrot.lane.b32.xlu0 %v107_v7, %s137_s30  ;;  %49 = vrot.lane.b32.xlu1 %v108_v8, %s138_s2 }
  0x12   :  { %55 = vrot.lane.b32.xlu0 %v109_v9, %s139_s7  ;;  %61 = vrot.lane.b32.xlu1 %v110_v10, %s140_s8 }
  0x16   :  { %67 = vrot.lane.b32.xlu0 %v111_v11, %s141_s13  ;;  %73 = vrot.lane.b32.xlu1 %v112_v12, %s142_s14 }
  0x1a   :  { %79 = vrot.lane.b32.xlu0 %v113_v13, %s143_s19  ;;  %85 = vrot.lane.b32.xlu1 %v114_v14, %s144_s20 }
  0x1e   :  { %91 = vrot.lane.b32.xlu0 %v115_v15, %s145_s0 }
  0x74   :  { %v8_v16 = vpop.permute.xlu0 %7   ;;  %v20_v17 = vpop.permute.xlu1 %19  }
  0x75   :  { %10 = vst.msk [vmem:[#allocation0] sm:$0x1] %vm9_vm1, %v8_v16  }
  0x78   :  { %v14_v18 = vpop.permute.xlu0 %13   ;;  %v26_v19 = vpop.permute.xlu1 %25  }
  0x79   :  { %16 = vst.msk [vmem:[#allocation0] sm:$0x1] %vm15_vm2, %v14_v18  }
  0x7a   :  { %22 = vst.msk [vmem:[#allocation0] sm:$0x1] %vm21_vm3, %v20_v17  }
  0x7b   :  { %28 = vst.msk [vmem:[#allocation0] sm:$0x1] %vm27_vm4, %v26_v19  }
  0x7c   :  { %v32_v20 = vpop.permute.xlu0 %31   ;;  %v38_v21 = vpop.permute.xlu1 %37  }
  0x7d   :  { %34 = vst.msk [vmem:[#allocation0] sm:$0x1] %vm33_vm5, %v32_v20  }
  0x7e   :  { %40 = vst.msk [vmem:[#allocation0] sm:$0x1] %vm39_vm6, %v38_v21  }
  0x80   :  { %v44_v22 = vpop.permute.xlu0 %43   ;;  %v50_v23 = vpop.permute.xlu1 %49  }
  0x81   :  { %46 = vst.msk [vmem:[#allocation0] sm:$0x1] %vm45_vm7, %v44_v22  }
  0x82   :  { %52 = vst.msk [vmem:[#allocation0] sm:$0x1] %vm51_vm8, %v50_v23  }
  0x84   :  { %v56_v24 = vpop.permute.xlu0 %55   ;;  %v62_v25 = vpop.permute.xlu1 %61  }
  0x85   :  { %58 = vst.msk [vmem:[#allocation0] sm:$0x1] %vm57_vm9, %v56_v24  }
  0x86   :  { %64 = vst.msk [vmem:[#allocation0] sm:$0x1] %vm63_vm10, %v62_v25  }
  0x88   :  { %v68_v26 = vpop.permute.xlu0 %67   ;;  %v74_v27 = vpop.permute.xlu1 %73  }
  0x89   :  { %70 = vst.msk [vmem:[#allocation0] sm:$0x1] %vm69_vm11, %v68_v26  }
  0x8a   :  { %76 = vst.msk [vmem:[#allocation0] sm:$0x1] %vm75_vm12, %v74_v27  }
  0x8c   :  { %v80_v28 = vpop.permute.xlu0 %79   ;;  %v86_v29 = vpop.permute.xlu1 %85  }
  0x8d   :  { %82 = vst.msk [vmem:[#allocation0] sm:$0x1] %vm81_vm13, %v80_v28  }
  0x8e   :  { %88 = vst.msk [vmem:[#allocation0] sm:$0x1] %vm87_vm14, %v86_v29  }
  0x90   :  { %v92_v30 = vpop.permute.xlu0 %91  }
  0x91   :  { %94 = vst.msk [vmem:[#allocation0] sm:$0x1] %vm93_vm15, %v92_v30  }
  0x98   :  { %v98_v31 = vld [vmem:[#allocation0] sm:$0x1] }
  0x99   :  { %100 = vst [vmem:[%s208_s1] sm:$0x1] %v98_v31 }

// kernel: tile.38
= control target key start
LH: loop header
LB: loop body
LE: loop exit
PB: predicated region body
PF: predicated region fallthrough
CT: control target
= control target key end

     0   :  { %s22_s0 = inlined_call_operand.vmem [shape: f32[16], index: 0, kind: input, shape index: {}]   ;;  %s23_s1 = inlined_call_operand.vmem [shape: f32[8,16], index: 1, kind: output, shape index: {}]  }
   0x1   :  { %v4_v0 = vld [vmem:[%s22_s0] ss:$0 sm:$0xff] }
   0x2   :  { %5 = vst [vmem:[%s23_s1] sm:$0xff] %v4_v0 }

// kernel: tile.39
= control target key start
LH: loop header
LB: loop body
LE: loop exit
PB: predicated region body
PF: predicated region fallthrough
CT: control target
= control target key end

     0   :  { %s67_s10 = smov 112   ;;  %s68_s11 = smov 80   ;;  %vm3_vm0 = vcmask 130048   ;;  %vm9_vm1 = vcmask 1048448   ;;  %vm15_vm2 = vcmask 917248   ;;  %vm21_vm3 = vcmask 786048   ;;  %s111_s0 = inlined_call_operand.vmem [shape: f32[8,16], index: 0, kind: input, shape index: {}]   ;;  %s112_s1 = inlined_call_operand.vmem [shape: f32[1,128], index: 1, kind: output, shape index: {}]  }
   0x1   :  { %v53_v0 = vld [vmem:[%s111_s0 + $0x7] sm:$0x1]   ;;  %v55_v1 = vld [vmem:[%s111_s0 + $0x5] sm:$0x1]   ;;  %v54_v2 = vld [vmem:[%s111_s0 + $0x6] sm:$0x1]  }
   0x2   :  { %7 = vrot.lane.b32.xlu0 %v53_v0, %s67_s10  ;;  %19 = vrot.lane.b32.xlu1 %v55_v1, %s68_s11  ;;  %v56_v3 = vld [vmem:[%s111_s0 + $0x4] sm:$0x1]   ;;  %v2_v4 = vld [vmem:[%s111_s0] sm:$0x1]   ;;  %s69_s18 = smov 96   ;;  %s70_s19 = smov 64  }
   0x3   :  { %4 = vst.msk [vmem:[#allocation0] sm:$0x1] %vm3_vm0, %v2_v4   ;;  %v57_v5 = vld [vmem:[%s111_s0 + $0x3] sm:$0x1]   ;;  %v58_v6 = vld [vmem:[%s111_s0 + $0x2] sm:$0x1]  }
   0x4   :  { %s71_s24 = smov 48   ;;  %s72_s25 = smov 32   ;;  %v59_v7 = vld [vmem:[%s111_s0 + $0x1] sm:$0x1]   ;;  %vm27_vm4 = vcmask 654848   ;;  %vm33_vm5 = vcmask 523648  }
   0x5   :  { %s73_s0 = smov 16   ;;  %vm39_vm6 = vcmask 392448   ;;  %vm45_vm7 = vcmask 261248  }
   0x6   :  { %13 = vrot.lane.b32.xlu0 %v54_v2, %s69_s18  ;;  %25 = vrot.lane.b32.xlu1 %v56_v3, %s70_s19 }
   0xa   :  { %31 = vrot.lane.b32.xlu0 %v57_v5, %s71_s24  ;;  %37 = vrot.lane.b32.xlu1 %v58_v6, %s72_s25 }
   0xe   :  { %43 = vrot.lane.b32.xlu0 %v59_v7, %s73_s0 }
  0x74   :  { %v8_v8 = vpop.permute.xlu0 %7   ;;  %v20_v9 = vpop.permute.xlu1 %19  }
  0x75   :  { %10 = vst.msk [vmem:[#allocation0] sm:$0x1] %vm9_vm1, %v8_v8  }
  0x78   :  { %v14_v10 = vpop.permute.xlu0 %13   ;;  %v26_v11 = vpop.permute.xlu1 %25  }
  0x79   :  { %16 = vst.msk [vmem:[#allocation0] sm:$0x1] %vm15_vm2, %v14_v10  }
  0x7a   :  { %22 = vst.msk [vmem:[#allocation0] sm:$0x1] %vm21_vm3, %v20_v9  }
  0x7b   :  { %28 = vst.msk [vmem:[#allocation0] sm:$0x1] %vm27_vm4, %v26_v11  }
  0x7c   :  { %v32_v12 = vpop.permute.xlu0 %31   ;;  %v38_v13 = vpop.permute.xlu1 %37  }
  0x7d   :  { %34 = vst.msk [vmem:[#allocation0] sm:$0x1] %vm33_vm5, %v32_v12  }
  0x7e   :  { %40 = vst.msk [vmem:[#allocation0] sm:$0x1] %vm39_vm6, %v38_v13  }
  0x80   :  { %v44_v14 = vpop.permute.xlu0 %43  }
  0x81   :  { %46 = vst.msk [vmem:[#allocation0] sm:$0x1] %vm45_vm7, %v44_v14  }
  0x88   :  { %v50_v15 = vld [vmem:[#allocation0] sm:$0x1] }
  0x89   :  { %52 = vst [vmem:[%s112_s1] sm:$0x1] %v50_v15 }

// kernel: _lambda_.1
= control target key start
LH: loop header
LB: loop body
LE: loop exit
PB: predicated region body
PF: predicated region fallthrough
CT: control target
= control target key end

     0   :  { %s4538_s0 = inlined_call_operand.vmem [shape: f32[2,16,64], index: 0, kind: input, shape index: {}]   ;;  %s4539_s1 = inlined_call_operand.vmem [shape: f32[64,128], index: 1, kind: input, shape index: {}]   ;;  %s4540_s2 = inlined_call_operand.vmem [shape: f32[64,128], index: 2, kind: input, shape index: {}]   ;;  %s4541_s3 = inlined_call_operand.vmem [shape: f32[64,128], index: 3, kind: input, shape index: {}]   ;;  %s4542_s4 = inlined_call_operand.vmem [shape: f32[1,128], index: 4, kind: input, shape index: {}]   ;;  %s4543_s5 = inlined_call_operand.vmem [shape: f32[128,128], index: 5, kind: input, shape index: {}]   ;;  %s4544_s6 = inlined_call_operand.vmem [shape: f32[128,128], index: 6, kind: input, shape index: {}]   ;;  %s4545_s7 = inlined_call_operand.vmem [shape: f32[128,128], index: 7, kind: input, shape index: {}]   ;;  %s4546_s8 = inlined_call_operand.vmem [shape: f32[1,128], index: 8, kind: input, shape index: {}]   ;;  %s4547_s9 = inlined_call_operand.vmem [shape: f32[64,128], index: 9, kind: input, shape index: {}]   ;;  %s4548_s10 = inlined_call_operand.vmem [shape: f32[64,128], index: 10, kind: input, shape index: {}]   ;;  %s4549_s11 = inlined_call_operand.vmem [shape: f32[64,128], index: 11, kind: input, shape index: {}]   ;;  %s4550_s12 = inlined_call_operand.vmem [shape: f32[1,128], index: 12, kind: input, shape index: {}]   ;;  %s4551_s13 = inlined_call_operand.vmem [shape: f32[128,128], index: 13, kind: input, shape index: {}]   ;;  %s4552_s14 = inlined_call_operand.vmem [shape: f32[128,128], index: 14, kind: input, shape index: {}]   ;;  %s4553_s15 = inlined_call_operand.vmem [shape: f32[128,128], index: 15, kind: input, shape index: {}]   ;;  %s4554_s16 = inlined_call_operand.vmem [shape: f32[1,128], index: 16, kind: input, shape index: {}]   ;;  %s4555_s17 = inlined_call_operand.vmem [shape: f32[8,16], index: 17, kind: input, shape index: {}]   ;;  %s4556_s18 = inlined_call_operand.vmem [shape: f32[128,64], index: 18, kind: input, shape index: {}]   ;;  %s4557_s19 = inlined_call_operand.vmem [shape: f32[128,12], index: 19, kind: input, shape index: {}]   ;;  %s4558_s20 = inlined_call_operand.vmem [shape: f32[1,12], index: 20, kind: input, shape index: {}]   ;;  %s4559_s21 = inlined_call_operand.vmem [shape: f32[2,1,12], index: 21, kind: output, shape index: {}]  }
   0x1   :  { %4565 = sst [smem:[#allocation2_spill]] %s4538_s0 }
   0x2   :  { %4566 = sst [smem:[#allocation3_spill]] %s4539_s1 }
   0x3   :  { %4567 = sst [smem:[#allocation4_spill]] %s4540_s2  ;;  %s3834_s2 = smov 0  }
   0x4   :  { %4568 = sst [smem:[#allocation5_spill]] %s4541_s3 }
   0x5   :  { %4569 = sst [smem:[#allocation6_spill]] %s4542_s4 }
   0x6   :  { %4570 = sst [smem:[#allocation7_spill]] %s4543_s5 }
   0x7 LB: > { %s2662_s25 = sadd.s32 4294967295, %s3719_s2   ;;  %p2666_p0 = scmp.ge.s32.totalorder %s3719_s2, 1  ;;  %s3719_s2 = sphi %s3834_s2, %s31_s2  }
   0x8   : > { %p587_p1 = scmp.lt.s32.totalorder %s3719_s2, 3 }
   0xa   : > { %p588_p2 = pnand %p2666_p0, %p587_p1 }
   0xb   : > { %p645_p3 = scmp.lt.s32.totalorder (!%p588_p2), %s2662_s25, 1  ;;  %v655_v0 = vlaneseq (!%p588_p2)  ;;  %s4571_s3 = sld [smem:[#allocation4_spill]] (!%p588_p2)  ;;  %vm674_vm0 = vcmask (!%p588_p2), 130048   ;;  %v3721_v12 = vmov (!%p588_p2), 0.0   ;;  %vm853_vm5 = vcmask (!%p588_p2), 523264   ;;  %v1284_v62 = vld [vmem:[%s4544_s6] sm:$0xff] (!%p588_p2) }
   0xc   : > { %591 = sbr.rel (%p588_p2) target bundleno = 2469 (0x9a5), region = 104  ;;  %s4572_s5 = sld [smem:[#allocation2_spill]] (!%p588_p2)  ;;  %v1285_v63 = vld [vmem:[%s4544_s6 + $0x8] sm:$0xff] (!%p588_p2)  ;;  %vm3723_vm6 = vmmov (!%p588_p2), 0   ;;  %vm1714_vm7 = vcmask (!%p588_p2), 64512   ;;  %vm2613_vm8 = vcmask (!%p588_p2), 90112  }
   0xd   : > { %v656_v1 = vshrl.u32 (!%p588_p2), %v655_v0, 7  ;;  %v659_v2 = vand.u32 (!%p588_p2), 127, %v655_v0  ;;  %s4573_s24 = sld [smem:[#allocation3_spill]] (!%p588_p2)  ;;  %s4574_s4 = sld [smem:[#allocation5_spill]] (!%p588_p2)  ;;  %v3439_v0 = vpack.c.bf16 (!%p588_p2), %v1285_v63, %v1284_v62  ;;  %v1456_v62 = vld [vmem:[%s4545_s7 + $0x30] sm:$0xff] (!%p588_p2)  ;;  %v1457_v63 = vld [vmem:[%s4545_s7 + $0x38] sm:$0xff] (!%p588_p2) }
   0xe   : > { %s4575_s27 = sld [smem:[#allocation6_spill]] (!%p588_p2) }
   0xf   : > { %v660_v5 = vadd.s32 (!%p588_p2), 1, %v659_v2  ;;  %v657_v6 = vadd.s32 (!%p588_p2), 8, %v656_v1  ;;  %v2671_v7 = vadd.s32 (!%p588_p2), 4294967295, %v659_v2  ;;  %v1287_v2 = vld [vmem:[%s4544_s6 + $0x18] sm:$0xff] (!%p588_p2) }
  0x11   : > { %v845_v3 = vld [vmem:[%s4571_s3] sm:$0xff] (!%p588_p2)  ;;  %v846_v4 = vld [vmem:[%s4571_s3 + $0x8] sm:$0xff] (!%p588_p2)  ;;  %vm661_vm1 = vcmp.eq.s32.totalorder (!%p588_p2), %v656_v1, %v660_v5  ;;  %vm662_vm2 = vcmp.eq.s32.totalorder (!%p588_p2), %v657_v6, %v660_v5  ;;  %vm668_vm3 = vcmp.eq.s32.totalorder (!%p588_p2), %v656_v1, %v2671_v7  ;;  %vm669_vm4 = vcmp.eq.s32.totalorder (!%p588_p2), %v657_v6, %v2671_v7  ;;  %v847_v15 = vld [vmem:[%s4571_s3 + $0x10] sm:$0xff] (!%p588_p2) }
  0x12   : > { %v3383_v10 = vpack.c.bf16 (!%p588_p2), %v846_v4, %v845_v3  ;;  %v3855_v13 = vsel (!%p588_p2), %vm661_vm1, 1.0, %v3721_v12  ;;  %v3858_v14 = vsel (!%p588_p2), %vm668_vm3, 1.0, %v3721_v12  ;;  %v848_v16 = vld [vmem:[%s4571_s3 + $0x18] sm:$0xff] (!%p588_p2)  ;;  %v3871_v17 = vsel (!%p588_p2), %vm662_vm2, 1.0, %v3721_v12  ;;  %v849_v20 = vld [vmem:[%s4571_s3 + $0x20] sm:$0xff] (!%p588_p2)  ;;  %v850_v21 = vld [vmem:[%s4571_s3 + $0x28] sm:$0xff] (!%p588_p2) }
  0x13   : > { %s4578_s25 = smov (!%p645_p3, %s2662_s25), 1  ;;  %2930 = vmatprep.mubr.msk.f32.mxu0 %vm674_vm0, %v3855_v13  ;;  %2937 = vmatprep.mubr.msk.f32.mxu1 %vm674_vm0, %v3858_v14  ;;  %v3874_v18 = vsel %vm669_vm4, 1.0, %v3721_v12  ;;  %v3387_v19 = vpack.c.bf16 %v848_v16, %v847_v15  ;;  %v3391_v22 = vpack.c.bf16 %v850_v21, %v849_v20  ;;  %v851_v23 = vld [vmem:[%s4571_s3 + $0x30] sm:$0xff]  ;;  %v852_v24 = vld [vmem:[%s4571_s3 + $0x38] sm:$0xff]  ;;  %v837_v26 = vld [vmem:[%s4573_s24] sm:$0xff] }
  0x14   : > { %s2702_s0 = sshll.u32 %s4578_s25, 4  ;;  %v3395_v25 = vpack.c.bf16 %v852_v24, %v851_v23  ;;  %v838_v27 = vld [vmem:[%s4573_s24 + $0x8] sm:$0xff]  ;;  %v839_v29 = vld [vmem:[%s4573_s24 + $0x10] sm:$0xff]  ;;  %v840_v30 = vld [vmem:[%s4573_s24 + $0x18] sm:$0xff] }
  0x15   : > { %s649_s22 = scalar_lea.vmem %s4572_s5, %s2702_s0  ;;  %v3399_v28 = vpack.c.bf16 %v838_v27, %v837_v26  ;;  %v3403_v31 = vpack.c.bf16 %v840_v30, %v839_v29  ;;  %v841_v32 = vld [vmem:[%s4573_s24 + $0x20] sm:$0xff]  ;;  %v842_v33 = vld [vmem:[%s4573_s24 + $0x28] sm:$0xff]  ;;  %v843_v35 = vld [vmem:[%s4573_s24 + $0x30] sm:$0xff]  ;;  %s4576_s5 = sld [smem:[#allocation7_spill]] }
  0x16   : > { %v653_v8 = vld [vmem:[%s649_s22] sm:$0xff]  ;;  %v654_v9 = vld [vmem:[%s649_s22 + $0x8] sm:$0xff]  ;;  %v3407_v34 = vpack.c.bf16 %v842_v33, %v841_v32  ;;  %v844_v36 = vld [vmem:[%s4573_s24 + $0x38] sm:$0xff]  ;;  %s652_s0 = scalar_lea.vmem %s4559_s21, %s4578_s25 }
  0x17   : > { %v3375_v11 = vpack.c.bf16 %v654_v9, %v653_v8  ;;  %v3411_v37 = vpack.c.bf16 %v844_v36, %v843_v35  ;;  %v1016_v38 = vld [vmem:[%s4574_s4] sm:$0xff]  ;;  %v1017_v39 = vld [vmem:[%s4574_s4 + $0x8] sm:$0xff]  ;;  %v1018_v41 = vld [vmem:[%s4574_s4 + $0x10] sm:$0xff] }
  0x18   : > { %v3415_v40 = vpack.c.bf16 %v1017_v39, %v1016_v38  ;;  %v1019_v42 = vld [vmem:[%s4574_s4 + $0x18] sm:$0xff]  ;;  %v1020_v48 = vld [vmem:[%s4574_s4 + $0x20] sm:$0xff]  ;;  %v1021_v49 = vld [vmem:[%s4574_s4 + $0x28] sm:$0xff] }
  0x19   : > { %3376 = vmatprep.subr.bf16.mxu0 %v3375_v11  ;;  %3380 = vmatprep.subr.bf16.mxu1 %v3375_v11  ;;  %v3419_v46 = vpack.c.bf16 %v1019_v42, %v1018_v41  ;;  %v3423_v50 = vpack.c.bf16 %v1021_v49, %v1020_v48  ;;  %v1022_v51 = vld [vmem:[%s4574_s4 + $0x30] sm:$0xff]  ;;  %v1023_v52 = vld [vmem:[%s4574_s4 + $0x38] sm:$0xff]  ;;  %v2684_v54 = vld [vmem:[%s4575_s27] ss:$0 sm:$0xff] }
  0x1a   : > { %3378 = vmatpush3.bf16.msra.mxu0 %v3375_v11  ;;  %3382 = vmatpush3.bf16.msra.mxu1 %v3375_v11  ;;  %v3427_v53 = vpack.c.bf16 %v1023_v52, %v1022_v51  ;;  %v1286_v1 = vld [vmem:[%s4544_s6 + $0x10] sm:$0xff]  ;;  %v1288_v4 = vld [vmem:[%s4544_s6 + $0x20] sm:$0xff]  ;;  %v1289_v5 = vld [vmem:[%s4544_s6 + $0x28] sm:$0xff] }
  0x1b   : > { %3384 = vmatprep.subr.bf16.mxu0 %v3383_v10  ;;  %v3443_v3 = vpack.c.bf16 %v1287_v2, %v1286_v1  ;;  %v3447_v6 = vpack.c.bf16 %v1289_v5, %v1288_v4  ;;  %v1290_v7 = vld [vmem:[%s4544_s6 + $0x30] sm:$0xff]  ;;  %v1293_v11 = vld [vmem:[%s4544_s6 + $0x48] sm:$0xff]  ;;  %v1299_v23 = vld [vmem:[%s4544_s6 + $0x78] sm:$0xff] }
  0x1c   : > { %v1294_v16 = vld [vmem:[%s4544_s6 + $0x50] sm:$0xff]  ;;  %v1297_v20 = vld [vmem:[%s4544_s6 + $0x68] sm:$0xff]  ;;  %v1271_v29 = vld [vmem:[%s4576_s5 + $0x18] sm:$0xff] }
  0x1d   : > { %2931 = vmatmul.mubr.msk.f32.vlgmr.msra.gmra.mrb[0].mxu0 %vm674_vm0, %v3871_v17  ;;  %2938 = vmatmul.mubr.msk.f32.vlgmr.msra.gmra.mrb[0].mxu1 %vm674_vm0, %v3874_v18  ;;  %v1269_v26 = vld [vmem:[%s4576_s5 + $0x8] sm:$0xff]  ;;  %v1275_v35 = vld [vmem:[%s4576_s5 + $0x38] sm:$0xff]  ;;  %v1450_v49 = vld [vmem:[%s4545_s7] sm:$0xff] }
  0x1e   : > { %3386 = vmatpush3.bf16.msra.mxu0 %v3383_v10  ;;  %2956 = vmatprep.mubr.msk.f32.mxu0 %vm853_vm5, %v653_v8  ;;  %v1291_v8 = vld [vmem:[%s4544_s6 + $0x38] sm:$0xff]  ;;  %v1292_v10 = vld [vmem:[%s4544_s6 + $0x40] sm:$0xff]  ;;  %v1273_v32 = vld [vmem:[%s4576_s5 + $0x28] sm:$0xff] }
  0x1f   : > { %3388 = vmatprep.subr.bf16.mxu0 %v3387_v19  ;;  %3001 = vmatprep.mubr.msk.f32.mxu1 %vm674_vm0, %v3855_v13  ;;  %v3455_v15 = vpack.c.bf16 %v1293_v11, %v1292_v10  ;;  %v1277_v38 = vld [vmem:[%s4576_s5 + $0x48] sm:$0xff]  ;;  %v1279_v41 = vld [vmem:[%s4576_s5 + $0x58] sm:$0xff]  ;;  %v1452_v52 = vld [vmem:[%s4545_s7 + $0x10] sm:$0xff] }
  0x20   : > { %v1458_v1 = vld [vmem:[%s4545_s7 + $0x40] sm:$0xff]  ;;  %v1459_v2 = vld [vmem:[%s4545_s7 + $0x48] sm:$0xff]  ;;  %v1460_v4 = vld [vmem:[%s4545_s7 + $0x50] sm:$0xff] }
  0x21   : > { %v1461_v5 = vld [vmem:[%s4545_s7 + $0x58] sm:$0xff]  ;;  %v1464_v10 = vld [vmem:[%s4545_s7 + $0x70] sm:$0xff] }
  0x22   : > { %3390 = vmatpush3.bf16.msra.mxu0 %v3387_v19  ;;  %v1296_v19 = vld [vmem:[%s4544_s6 + $0x60] sm:$0xff]  ;;  %v1465_v11 = vld [vmem:[%s4545_s7 + $0x78] sm:$0xff] }
  0x23   : > { %3392 = vmatprep.subr.bf16.mxu0 %v3391_v22  ;;  %v3463_v21 = vpack.c.bf16 %v1297_v20, %v1296_v19 }
  0x26   : > { %3394 = vmatpush3.bf16.msra.mxu0 %v3391_v22  ;;  %v1298_v22 = vld [vmem:[%s4544_s6 + $0x70] sm:$0xff] }
  0x27   : > { %3396 = vmatprep.subr.bf16.mxu0 %v3395_v25  ;;  %v3467_v24 = vpack.c.bf16 %v1299_v23, %v1298_v22 }
  0x2a   : > { %3398 = vmatpush3.bf16.msra.mxu0 %v3395_v25  ;;  %v1268_v25 = vld [vmem:[%s4576_s5] sm:$0xff] }
  0x2b   : > { %3400 = vmatprep.subr.bf16.mxu0 %v3399_v28  ;;  %v3471_v27 = vpack.c.bf16 %v1269_v26, %v1268_v25  ;;  %v1629_v25 = vld [vmem:[%s4556_s18 + $0x8] sm:$0xff] }
  0x2d   : > { %2957 = vmatmul.mubr.msk.f32.vlgmr.msra.gmra.mrb[2].mxu0 %vm853_vm5, %v654_v9  ;;  %v3451_v9 = vpack.c.bf16 %v1291_v8, %v1290_v7  ;;  %v1462_v7 = vld [vmem:[%s4545_s7 + $0x60] sm:$0xff]  ;;  %v1463_v8 = vld [vmem:[%s4545_s7 + $0x68] sm:$0xff] }
  0x2e   : > { %3402 = vmatpush3.bf16.msra.mxu0 %v3399_v28  ;;  %v1270_v28 = vld [vmem:[%s4576_s5 + $0x10] sm:$0xff] }
  0x2f   : > { %3404 = vmatprep.subr.bf16.mxu0 %v3403_v31  ;;  %v3475_v30 = vpack.c.bf16 %v1271_v29, %v1270_v28  ;;  %v1630_v29 = vld [vmem:[%s4556_s18 + $0x10] sm:$0xff] }
  0x32   : > { %3406 = vmatpush3.bf16.msra.mxu0 %v3403_v31  ;;  %v1272_v31 = vld [vmem:[%s4576_s5 + $0x20] sm:$0xff] }
  0x33   : > { %3408 = vmatprep.subr.bf16.mxu0 %v3407_v34  ;;  %v3479_v33 = vpack.c.bf16 %v1273_v32, %v1272_v31  ;;  %v1632_v32 = vld [vmem:[%s4556_s18 + $0x20] sm:$0xff] }
  0x36   : > { %3410 = vmatpush3.bf16.msra.mxu0 %v3407_v34  ;;  %v1274_v34 = vld [vmem:[%s4576_s5 + $0x30] sm:$0xff] }
  0x37   : > { %3412 = vmatprep.subr.bf16.mxu0 %v3411_v37  ;;  %v3483_v36 = vpack.c.bf16 %v1275_v35, %v1274_v34  ;;  %v1634_v35 = vld [vmem:[%s4556_s18 + $0x30] sm:$0xff] }
  0x3a   : > { %3414 = vmatpush3.bf16.msra.mxu0 %v3411_v37  ;;  %v1276_v37 = vld [vmem:[%s4576_s5 + $0x40] sm:$0xff] }
  0x3b   : > { %3416 = vmatprep.subr.bf16.mxu0 %v3415_v40  ;;  %v3487_v39 = vpack.c.bf16 %v1277_v38, %v1276_v37  ;;  %v1636_v38 = vld [vmem:[%s4556_s18 + $0x40] sm:$0xff] }
  0xf0   : > { %v2932_v43 = vpop.f32.mrb[0].mxu0  ;;  %v2939_v44 = vpop.f32.mrb[0].mxu1 }
  0xf1   : > { %v747_v45 = vpop.f32.mrb[1].mxu0  ;;  %v828_v47 = vpop.f32.mrb[1].mxu1 }
  0xf2   : > { %2975 = vmatprep.mubr.msk.f32.mxu0 %vm853_vm5, %v747_v45 }
  0xf3   : > { %2976 = vmatmul.mubr.msk.f32.vlgmr.msra.gmra.mrb[2].mxu0 %vm853_vm5, %v2932_v43  ;;  %v1280_v43 = vld [vmem:[%s4576_s5 + $0x60] sm:$0xff] }
  0xf4   : > { %3418 = vmatpush3.bf16.msra.mxu0 %v3415_v40  ;;  %2994 = vmatprep.mubr.msk.f32.mxu0 %vm853_vm5, %v828_v47  ;;  %v1278_v40 = vld [vmem:[%s4576_s5 + $0x50] sm:$0xff]  ;;  %v1283_v47 = vld [vmem:[%s4576_s5 + $0x78] sm:$0xff] }
  0xf5   : > { %3420 = vmatprep.subr.bf16.mxu0 %v3419_v46  ;;  %v3491_v42 = vpack.c.bf16 %v1279_v41, %v1278_v40  ;;  %v1638_v41 = vld [vmem:[%s4556_s18 + $0x50] sm:$0xff] }
  0xf8   : > { %3422 = vmatpush3.bf16.msra.mxu0 %v3419_v46  ;;  %v1282_v46 = vld [vmem:[%s4576_s5 + $0x70] sm:$0xff] }
  0xf9   : > { %3424 = vmatprep.subr.bf16.mxu0 %v3423_v50  ;;  %v3499_v48 = vpack.c.bf16 %v1283_v47, %v1282_v46  ;;  %v1642_v47 = vld [vmem:[%s4556_s18 + $0x70] sm:$0xff] }
  0xfc   : > { %3426 = vmatpush3.bf16.msra.mxu0 %v3423_v50  ;;  %v1451_v50 = vld [vmem:[%s4545_s7 + $0x8] sm:$0xff] }
  0xfd   : > { %3428 = vmatprep.subr.bf16.mxu0 %v3427_v53  ;;  %v3503_v51 = vpack.c.bf16 %v1451_v50, %v1450_v49 }
 0x100   : > { %3430 = vmatpush3.bf16.msra.mxu0 %v3427_v53  ;;  %v1453_v53 = vld [vmem:[%s4545_s7 + $0x18] sm:$0xff] }
 0x103   : > { %2995 = vmatmul.mubr.msk.f32.vlgmr.msra.gmra.mrb[2].mxu0 %vm853_vm5, %v2939_v44  ;;  %v1281_v44 = vld [vmem:[%s4576_s5 + $0x68] sm:$0xff] }
 0x104   : > { %v3495_v45 = vpack.c.bf16 %v1281_v44, %v1280_v43  ;;  %3120 = vmatprep.mubr.msk.f32.mxu0 %vm3723_vm6, %v3721_v12  ;;  %v1640_v44 = vld [vmem:[%s4556_s18 + $0x60] sm:$0xff] }
 0x1d6   : > { %v2996_v55 = vpop.f32.mrb[2].mxu0 }
 0x1d7   : > { %v3951_v56 = vadd.f32 %v2996_v55, %v2684_v54  ;;  %v1096_v57 = vpop.f32.mrb[3].mxu0 }
 0x1d8   : > { %v1114_v58 = vadd.f32 %v2684_v54, %v1096_v57  ;;  %v1454_v57 = vld [vmem:[%s4545_s7 + $0x20] sm:$0xff] }
 0x1d9   : > { %v1117_v59 = vmax.f32 %v3951_v56, 0.0  ;;  %v3507_v56 = vpack.c.bf16 %v1453_v53, %v1452_v52  ;;  %v1859_v52 = vld [vmem:[%s4547_s9] sm:$0xff]  ;;  %v1860_v53 = vld [vmem:[%s4547_s9 + $0x8] sm:$0xff] }
 0x1da   : > { %v1116_v60 = vmax.f32 %v1114_v58, 0.0  ;;  %v1455_v58 = vld [vmem:[%s4545_s7 + $0x28] sm:$0xff] }
 0x1dc   : > { %v3431_v61 = vpack.c.bf16 %v1117_v59, %v1116_v60 }
 0x1de   : > { %3432 = vmatprep.subr.bf16.mxu1 %v3431_v61 }
 0x1df   : > { %3434 = vmatpush3.bf16.msra.mxu1 %v3431_v61 }
 0x1e0   : > { %3436 = vmatprep.subr.bf16.mxu1 %v3431_v61 }
 0x1e2   : > { %3002 = vmatmul.mubr.msk.f32.vlgmr.msra.gmra.mrb[2].mxu1 %vm674_vm0, %v3871_v17  ;;  %v1295_v17 = vld [vmem:[%s4544_s6 + $0x58] sm:$0xff] }
 0x1e3   : > { %3438 = vmatpush3.bf16.msra.mxu1 %v3431_v61  ;;  %3008 = vmatprep.mubr.msk.f32.mxu1 %vm674_vm0, %v3858_v14 }
 0x1e4   : > { %3440 = vmatprep.subr.bf16.mxu1 %v3439_v0 }
 0x1e6   : > { %3009 = vmatmul.mubr.msk.f32.vlgmr.msra.gmra.mrb[4].mxu1 %vm674_vm0, %v3874_v18  ;;  %v3459_v18 = vpack.c.bf16 %v1295_v17, %v1294_v16  ;;  %v3722_v16 = vmov 0.0|0.0   ;;  %v2689_v17 = vld [vmem:[%s4546_s8] ss:$0 sm:$0xff] }
 0x1e7   : > { %3442 = vmatpush3.bf16.msra.mxu1 %v3439_v0  ;;  %3043 = vmatprep.mubr.f32.mxu1 %v1116_v60  ;;  %v3511_v60 = vpack.c.bf16 %v1455_v58, %v1454_v57  ;;  %v3515_v0 = vpack.c.bf16 %v1457_v63, %v1456_v62  ;;  %v1863_v58 = vld [vmem:[%s4547_s9 + $0x20] sm:$0xff]  ;;  %v1866_v62 = vld [vmem:[%s4547_s9 + $0x38] sm:$0xff] }
 0x1e8   : > { %3444 = vmatprep.subr.bf16.mxu1 %v3443_v3  ;;  %3535 = vmatprep.subr.bf16.mxu0 %v3722_v16 }
 0x1eb   : > { %3446 = vmatpush3.bf16.msra.mxu1 %v3443_v3  ;;  %v3519_v3 = vpack.c.bf16 %v1459_v2, %v1458_v1  ;;  %v1867_v1 = vld [vmem:[%s4548_s10] sm:$0xff]  ;;  %v1868_v2 = vld [vmem:[%s4548_s10 + $0x8] sm:$0xff] }
 0x1ec   : > { %3448 = vmatprep.subr.bf16.mxu1 %v3447_v6 }
 0x1ef   : > { %3450 = vmatpush3.bf16.msra.mxu1 %v3447_v6  ;;  %v3523_v6 = vpack.c.bf16 %v1461_v5, %v1460_v4  ;;  %v3563_v4 = vpack.c.bf16 %v1868_v2, %v1867_v1  ;;  %v1869_v5 = vld [vmem:[%s4548_s10 + $0x10] sm:$0xff]  ;;  %v2259_v1 = vld [vmem:[%s4551_s13 + $0x38] sm:$0xff]  ;;  %v2276_v2 = vld [vmem:[%s4552_s14 + $0x40] sm:$0xff] }
 0x1f0   : > { %3452 = vmatprep.subr.bf16.mxu1 %v3451_v9 }
 0x1f3   : > { %3454 = vmatpush3.bf16.msra.mxu1 %v3451_v9  ;;  %v3527_v9 = vpack.c.bf16 %v1463_v8, %v1462_v7  ;;  %v1871_v8 = vld [vmem:[%s4548_s10 + $0x20] sm:$0xff] }
 0x1f4   : > { %3456 = vmatprep.subr.bf16.mxu1 %v3455_v15 }
 0x1f7   : > { %3458 = vmatpush3.bf16.msra.mxu1 %v3455_v15  ;;  %v3531_v15 = vpack.c.bf16 %v1465_v11, %v1464_v10  ;;  %v1873_v11 = vld [vmem:[%s4548_s10 + $0x30] sm:$0xff] }
 0x1f8   : > { %3460 = vmatprep.subr.bf16.mxu1 %v3459_v18 }
 0x1fb   : > { %3462 = vmatpush3.bf16.msra.mxu1 %v3459_v18 }
 0x1fc   : > { %3464 = vmatprep.subr.bf16.mxu1 %v3463_v21 }
 0x1ff   : > { %3466 = vmatpush3.bf16.msra.mxu1 %v3463_v21 }
 0x200   : > { %3468 = vmatprep.subr.bf16.mxu1 %v3467_v24 }
 0x203   : > { %3470 = vmatpush3.bf16.msra.mxu1 %v3467_v24  ;;  %v1628_v24 = vld [vmem:[%s4556_s18] sm:$0xff] }
 0x204   : > { %3472 = vmatprep.subr.bf16.mxu1 %v3471_v27  ;;  %v3539_v28 = vpack.c.bf16 %v1629_v25, %v1628_v24  ;;  %v2025_v24 = vld [vmem:[%s4549_s11 + $0x20] sm:$0xff]  ;;  %v2026_v25 = vld [vmem:[%s4549_s11 + $0x28] sm:$0xff] }
 0x206   : > { %3044 = vmatmul.mubr.f32.vlgmr.msra.gmra.mrb[6].mxu1 %v1117_v59 }
 0x207   : > { %3474 = vmatpush3.bf16.msra.mxu1 %v3471_v27  ;;  %v1554_v27 = vld [vmem:[%s4555_s17] sm:$0xff] }
 0x208   : > { %3476 = vmatprep.subr.bf16.mxu1 %v3475_v30 }
 0x20b   : > { %3478 = vmatpush3.bf16.msra.mxu1 %v3475_v30  ;;  %v1631_v30 = vld [vmem:[%s4556_s18 + $0x18] sm:$0xff] }
 0x20c   : > { %3480 = vmatprep.subr.bf16.mxu1 %v3479_v33  ;;  %v3542_v31 = vpack.c.bf16 %v1631_v30, %v1630_v29 }
 0x20f   : > { %3482 = vmatpush3.bf16.msra.mxu1 %v3479_v33  ;;  %v1633_v33 = vld [vmem:[%s4556_s18 + $0x28] sm:$0xff] }
 0x210   : > { %3484 = vmatprep.subr.bf16.mxu1 %v3483_v36  ;;  %v3545_v34 = vpack.c.bf16 %v1633_v33, %v1632_v32 }
 0x213   : > { %3486 = vmatpush3.bf16.msra.mxu1 %v3483_v36  ;;  %v1635_v36 = vld [vmem:[%s4556_s18 + $0x38] sm:$0xff] }
 0x214   : > { %3488 = vmatprep.subr.bf16.mxu1 %v3487_v39  ;;  %v3548_v37 = vpack.c.bf16 %v1635_v36, %v1634_v35 }
 0x217   : > { %3490 = vmatpush3.bf16.msra.mxu1 %v3487_v39  ;;  %v1637_v39 = vld [vmem:[%s4556_s18 + $0x48] sm:$0xff] }
 0x218   : > { %3492 = vmatprep.subr.bf16.mxu1 %v3491_v42  ;;  %v3551_v40 = vpack.c.bf16 %v1637_v39, %v1636_v38 }
 0x21b   : > { %3494 = vmatpush3.bf16.msra.mxu1 %v3491_v42  ;;  %v1639_v42 = vld [vmem:[%s4556_s18 + $0x58] sm:$0xff] }
 0x21c   : > { %3496 = vmatprep.subr.bf16.mxu1 %v3495_v45  ;;  %v3554_v43 = vpack.c.bf16 %v1639_v42, %v1638_v41 }
 0x21f   : > { %3498 = vmatpush3.bf16.msra.mxu1 %v3495_v45  ;;  %v1641_v45 = vld [vmem:[%s4556_s18 + $0x68] sm:$0xff] }
 0x220   : > { %3500 = vmatprep.subr.bf16.mxu1 %v3499_v48  ;;  %v3557_v46 = vpack.c.bf16 %v1641_v45, %v1640_v44  ;;  %v2269_v44 = vld [vmem:[%s4552_s14 + $0x8] sm:$0xff] }
 0x223   : > { %3502 = vmatpush3.bf16.msra.mxu1 %v3499_v48  ;;  %v1643_v48 = vld [vmem:[%s4556_s18 + $0x78] sm:$0xff] }
 0x224   : > { %3504 = vmatprep.subr.bf16.mxu1 %v3503_v51  ;;  %v3560_v49 = vpack.c.bf16 %v1643_v48, %v1642_v47  ;;  %v2252_v48 = vld [vmem:[%s4551_s13] sm:$0xff] }
 0x2b5   : > { %v3003_v54 = vpop.f32.mrb[2].mxu1 }
 0x2b6   : > { %v1184_v55 = vpop.f32.mrb[3].mxu1 }
 0x2b7   : > { %3078 = vmatprep.mubr.f32.mxu1 %v1184_v55  ;;  %v3575_v55 = vpack.c.bf16 %v1860_v53, %v1859_v52 }
 0x2b8   : > { %3079 = vmatmul.mubr.f32.vlgmr.msra.gmra.mrb[6].mxu1 %v3003_v54  ;;  %v1861_v54 = vld [vmem:[%s4547_s9 + $0x10] sm:$0xff] }
 0x2b9   : > { %3506 = vmatpush3.bf16.msra.mxu1 %v3503_v51  ;;  %v3010_v59 = vpop.f32.mrb[4].mxu1 }
 0x2ba   : > { %3508 = vmatprep.subr.bf16.mxu1 %v3507_v56  ;;  %v1259_v61 = vpop.f32.mrb[5].mxu1 }
 0x2bb   : > { %3113 = vmatprep.mubr.f32.mxu1 %v1259_v61  ;;  %v1865_v61 = vld [vmem:[%s4547_s9 + $0x30] sm:$0xff] }
 0x2bc   : > { %v3584_v63 = vpack.c.bf16 %v1866_v62, %v1865_v61  ;;  %v2275_v61 = vld [vmem:[%s4552_s14 + $0x38] sm:$0xff] }
 0x2bd   : > { %3510 = vmatpush3.bf16.msra.mxu1 %v3507_v56  ;;  %v1862_v56 = vld [vmem:[%s4547_s9 + $0x18] sm:$0xff] }
 0x2be   : > { %3512 = vmatprep.subr.bf16.mxu1 %v3511_v60  ;;  %v3578_v57 = vpack.c.bf16 %v1862_v56, %v1861_v54  ;;  %v2254_v54 = vld [vmem:[%s4551_s13 + $0x10] sm:$0xff]  ;;  %v2273_v56 = vld [vmem:[%s4552_s14 + $0x28] sm:$0xff] }
 0x2c1   : > { %3514 = vmatpush3.bf16.msra.mxu1 %v3511_v60 }
 0x2c2   : > { %3516 = vmatprep.subr.bf16.mxu1 %v3515_v0 }
 0x2c5   : > { %3518 = vmatpush3.bf16.msra.mxu1 %v3515_v0 }
 0x2c6   : > { %3520 = vmatprep.subr.bf16.mxu1 %v3519_v3 }
 0x2c9   : > { %3522 = vmatpush3.bf16.msra.mxu1 %v3519_v3 }
 0x2ca   : > { %3524 = vmatprep.subr.bf16.mxu1 %v3523_v6 }
 0x2cd   : > { %3526 = vmatpush3.bf16.msra.mxu1 %v3523_v6  ;;  %v1870_v6 = vld [vmem:[%s4548_s10 + $0x18] sm:$0xff] }
 0x2ce   : > { %3528 = vmatprep.subr.bf16.mxu1 %v3527_v9  ;;  %v3566_v7 = vpack.c.bf16 %v1870_v6, %v1869_v5  ;;  %v2260_v6 = vld [vmem:[%s4551_s13 + $0x40] sm:$0xff] }
 0x2d1   : > { %3530 = vmatpush3.bf16.msra.mxu1 %v3527_v9  ;;  %v1872_v9 = vld [vmem:[%s4548_s10 + $0x28] sm:$0xff] }
 0x2d2   : > { %3532 = vmatprep.subr.bf16.mxu1 %v3531_v15  ;;  %v3569_v10 = vpack.c.bf16 %v1872_v9, %v1871_v8  ;;  %v2278_v8 = vld [vmem:[%s4552_s14 + $0x50] sm:$0xff]  ;;  %v2279_v9 = vld [vmem:[%s4552_s14 + $0x58] sm:$0xff] }
 0x2d5   : > { %3534 = vmatpush3.bf16.msra.mxu1 %v3531_v15  ;;  %v1874_v15 = vld [vmem:[%s4548_s10 + $0x38] sm:$0xff] }
 0x2d6   : > { %3574 = vmatprep.subr.bf16.mxu1 %v3722_v16 }
 0x2d8   : > { %3114 = vmatmul.mubr.f32.vlgmr.msra.gmra.mrb[6].mxu1 %v3010_v59  ;;  %v1864_v59 = vld [vmem:[%s4547_s9 + $0x28] sm:$0xff] }
 0x2d9   : > { %3203 = vmatprep.mubr.msk.f32.mxu1 %vm3723_vm6, %v3721_v12  ;;  %3576 = vmatpush3.bf16.msra.mxu1 %v3575_v55  ;;  %v3581_v60 = vpack.c.bf16 %v1864_v59, %v1863_v58  ;;  %v2255_v55 = vld [vmem:[%s4551_s13 + $0x18] sm:$0xff]  ;;  %v2256_v58 = vld [vmem:[%s4551_s13 + $0x20] sm:$0xff]  ;;  %v2257_v59 = vld [vmem:[%s4551_s13 + $0x28] sm:$0xff] }
 0x2da   : > { %3577 = vmatprep.subr.bf16.mxu1 %v3722_v16  ;;  %v3629_v62 = vpack.c.bf16 %v2257_v59, %v2256_v58 }
 0x2dd   : > { %3579 = vmatpush3.bf16.msra.mxu1 %v3578_v57 }
 0x2de   : > { %3580 = vmatprep.subr.bf16.mxu1 %v3722_v16 }
 0x2e1   : > { %3582 = vmatpush3.bf16.msra.mxu1 %v3581_v60  ;;  %v2274_v60 = vld [vmem:[%s4552_s14 + $0x30] sm:$0xff] }
 0x2e2   : > { %3583 = vmatprep.subr.bf16.mxu1 %v3722_v16 }
 0x2e5   : > { %3585 = vmatpush3.bf16.msra.mxu1 %v3584_v63  ;;  %v3608_v63 = vpack.c.bf16 %v2275_v61, %v2274_v60 }
 0x2e6   : > { %3225 = vmatprep.subr.mxu1 %v3721_v12 }
 0x3ab   : > { %v3115_v18 = vpop.f32.mrb[6].mxu1 }
 0x3ac   : > { %v1551_v19 = vadd.f32 %v3115_v18, %v2689_v17  ;;  %v1532_v20 = vpop.f32.mrb[7].mxu1  ;;  %v2021_v18 = vld [vmem:[%s4549_s11] sm:$0xff] }
 0x3ad   : > { %v1550_v21 = vadd.f32 %v2689_v17, %v1532_v20  ;;  %v3572_v17 = vpack.c.bf16 %v1874_v15, %v1873_v11  ;;  %v3614_v11 = vpack.c.bf16 %v2279_v9, %v2278_v8  ;;  %v2262_v15 = vld [vmem:[%s4551_s13 + $0x50] sm:$0xff] }
 0x3ae   : > { %v1553_v22 = vmax.f32 %v1551_v19, 0.0  ;;  %v2022_v19 = vld [vmem:[%s4549_s11 + $0x8] sm:$0xff]  ;;  %v2536_v9 = vld [vmem:[%s4557_s19 + $0x50] sm:$0xff] }
 0x3af   : > { %v1552_v23 = vmax.f32 %v1550_v21, 0.0  ;;  %v3587_v20 = vpack.c.bf16 %v2022_v19, %v2021_v18  ;;  %v2023_v21 = vld [vmem:[%s4549_s11 + $0x10] sm:$0xff]  ;;  %v2280_v18 = vld [vmem:[%s4552_s14 + $0x60] sm:$0xff]  ;;  %v2281_v19 = vld [vmem:[%s4552_s14 + $0x68] sm:$0xff] }
 0x3b1   : > { %v3536_v26 = vpack.c.bf16 %v1553_v22, %v1552_v23  ;;  %v2024_v22 = vld [vmem:[%s4549_s11 + $0x18] sm:$0xff] }
 0x3b2   : > { %v3590_v23 = vpack.c.bf16 %v2024_v22, %v2023_v21  ;;  %v3617_v21 = vpack.c.bf16 %v2281_v19, %v2280_v18  ;;  %v2264_v22 = vld [vmem:[%s4551_s13 + $0x60] sm:$0xff]  ;;  %v2540_v19 = vld [vmem:[%s4557_s19 + $0x70] sm:$0xff] }
 0x3b3   : > { %3537 = vmatpush3.bf16.msra.mxu0 %v3536_v26  ;;  %v3593_v26 = vpack.c.bf16 %v2026_v25, %v2025_v24  ;;  %v2282_v24 = vld [vmem:[%s4552_s14 + $0x70] sm:$0xff]  ;;  %v2283_v25 = vld [vmem:[%s4552_s14 + $0x78] sm:$0xff] }
 0x3b4   : > { %3538 = vmatprep.subr.bf16.mxu0 %v3722_v16 }
 0x3b6   : > { %3121 = vmatmul.mubr.msk.f32.vlgmr.msra.gmra.mrb[4].mxu0 %vm674_vm0, %v1554_v27  ;;  %v2027_v27 = vld [vmem:[%s4549_s11 + $0x30] sm:$0xff] }
 0x3b7   : > { %3540 = vmatpush3.bf16.msra.mxu0 %v3539_v28  ;;  %3155 = vmatprep.mubr.msk.f32.mxu0 %vm3723_vm6, %v3721_v12  ;;  %v2028_v28 = vld [vmem:[%s4549_s11 + $0x38] sm:$0xff] }
 0x3b8   : > { %3541 = vmatprep.subr.bf16.mxu0 %v3722_v16  ;;  %v3596_v29 = vpack.c.bf16 %v2028_v28, %v2027_v27  ;;  %v3620_v27 = vpack.c.bf16 %v2283_v25, %v2282_v24  ;;  %v2266_v28 = vld [vmem:[%s4551_s13 + $0x70] sm:$0xff] }
 0x3bb   : > { %3543 = vmatpush3.bf16.msra.mxu0 %v3542_v31 }
 0x3bc   : > { %3544 = vmatprep.subr.bf16.mxu0 %v3722_v16 }
 0x3bf   : > { %3546 = vmatpush3.bf16.msra.mxu0 %v3545_v34 }
 0x3c0   : > { %3547 = vmatprep.subr.bf16.mxu0 %v3722_v16 }
 0x3c3   : > { %3549 = vmatpush3.bf16.msra.mxu0 %v3548_v37 }
 0x3c4   : > { %3550 = vmatprep.subr.bf16.mxu0 %v3722_v16 }
 0x3c7   : > { %3552 = vmatpush3.bf16.msra.mxu0 %v3551_v40  ;;  %v2696_v40 = vld [vmem:[%s4550_s12] ss:$0 sm:$0xff] }
 0x3c8   : > { %3553 = vmatprep.subr.bf16.mxu0 %v3722_v16 }
 0x3cb   : > { %3555 = vmatpush3.bf16.msra.mxu0 %v3554_v43  ;;  %v2268_v43 = vld [vmem:[%s4552_s14] sm:$0xff] }
 0x3cc   : > { %3556 = vmatprep.subr.bf16.mxu0 %v3722_v16  ;;  %v3599_v47 = vpack.c.bf16 %v2269_v44, %v2268_v43  ;;  %v2432_v43 = vld [vmem:[%s4553_s15 + $0x40] sm:$0xff]  ;;  %v2433_v44 = vld [vmem:[%s4553_s15 + $0x48] sm:$0xff] }
 0x3cf   : > { %3558 = vmatpush3.bf16.msra.mxu0 %v3557_v46 }
 0x3d0   : > { %3559 = vmatprep.subr.bf16.mxu0 %v3722_v16 }
 0x3d3   : > { %3561 = vmatpush3.bf16.msra.mxu0 %v3560_v49  ;;  %v2253_v49 = vld [vmem:[%s4551_s13 + $0x8] sm:$0xff] }
 0x3d4   : > { %3158 = vmatprep.subr.mxu0 %v3721_v12  ;;  %v3623_v52 = vpack.c.bf16 %v2253_v49, %v2252_v48  ;;  %v2436_v49 = vld [vmem:[%s4553_s15 + $0x60] sm:$0xff] }
 0x489   : > { %v1624_v50 = vpop.f32.mrb[4].mxu0 }
 0x48a   : > { %v3122_v51 = vpop.f32.mrb[5].mxu0  ;;  %3156 = vmatmul.mubr.f32.vlgmr.msra.gmra.mrb[6].mxu0 %v1624_v50  ;;  %v2270_v50 = vld [vmem:[%s4552_s14 + $0x10] sm:$0xff] }
 0x48b   : > { %3160 = vmatprep.mubr.msk.f32.mxu0 %vm3723_vm6, %v3721_v12  ;;  %v2271_v51 = vld [vmem:[%s4552_s14 + $0x18] sm:$0xff] }
 0x48c   : > { %v3602_v53 = vpack.c.bf16 %v2271_v51, %v2270_v50  ;;  %v2437_v50 = vld [vmem:[%s4553_s15 + $0x68] sm:$0xff] }
 0x48d   : > { %v3665_v51 = vpack.c.bf16 %v2437_v50, %v2436_v49 }
 0x55d   : > { %v1710_v0 = vpop.f32.mrb[6].mxu0 }
 0x55e   : > { %v3157_v3 = vpop.f32.mrb[7].mxu0  ;;  %3159 = vmatpush3.msra.mxu0 %v1710_v0 }
 0x55f   : > { %3161 = vmatmul.mubr.msk.f32.vlgmr.msra.gmra.mrb[8].mxu0 %vm1714_vm7, %v3855_v13  ;;  %3163 = vmatprep.subr.mxu0 %v3721_v12  ;;  %v2277_v3 = vld [vmem:[%s4552_s14 + $0x48] sm:$0xff] }
 0x560   : > { %3164 = vmatpush3.msra.mxu0 %v1710_v0  ;;  %3165 = vmatprep.mubr.msk.f32.mxu0 %vm3723_vm6, %v3721_v12  ;;  %v3611_v5 = vpack.c.bf16 %v2277_v3, %v2276_v2 }
 0x561   : > { %3562 = vmatprep.subr.bf16.mxu0 %v3722_v16 }
 0x563   : > { %3166 = vmatmul.mubr.msk.f32.vlgmr.msra.gmra.mrb[10].mxu0 %vm1714_vm7, %v3858_v14 }
 0x564   : > { %3564 = vmatpush3.bf16.msra.mxu0 %v3563_v4  ;;  %3184 = vmatprep.mubr.msk.f32.mxu0 %vm3723_vm6, %v3721_v12 }
 0x565   : > { %3565 = vmatprep.subr.bf16.mxu0 %v3722_v16 }
 0x568   : > { %3567 = vmatpush3.bf16.msra.mxu0 %v3566_v7  ;;  %v2261_v7 = vld [vmem:[%s4551_s13 + $0x48] sm:$0xff] }
 0x569   : > { %3568 = vmatprep.subr.bf16.mxu0 %v3722_v16 }
 0x56c   : > { %3570 = vmatpush3.bf16.msra.mxu0 %v3569_v10  ;;  %v3635_v10 = vpack.c.bf16 %v2261_v7, %v2260_v6  ;;  %v2535_v7 = vld [vmem:[%s4557_s19 + $0x48] sm:$0xff] }
 0x56d   : > { %3571 = vmatprep.subr.bf16.mxu0 %v3722_v16 }
 0x570   : > { %3573 = vmatpush3.bf16.msra.mxu0 %v3572_v17  ;;  %v2263_v17 = vld [vmem:[%s4551_s13 + $0x58] sm:$0xff] }
 0x571   : > { %3586 = vmatprep.subr.bf16.mxu0 %v3722_v16 }
 0x573   : > { %3185 = vmatmul.mubr.msk.f32.vlgmr.msra.gmra.mrb[12].mxu0 %vm853_vm5, %v1710_v0  ;;  %v2258_v0 = vld [vmem:[%s4551_s13 + $0x30] sm:$0xff] }
 0x574   : > { %3588 = vmatpush3.bf16.msra.mxu0 %v3587_v20  ;;  %3222 = vmatprep.mubr.msk.f32.mxu0 %vm3723_vm6, %v3721_v12  ;;  %v3632_v4 = vpack.c.bf16 %v2259_v1, %v2258_v0  ;;  %v3638_v20 = vpack.c.bf16 %v2263_v17, %v2262_v15  ;;  %v2531_v0 = vld [vmem:[%s4557_s19 + $0x28] sm:$0xff]  ;;  %v2538_v15 = vld [vmem:[%s4557_s19 + $0x60] sm:$0xff] }
 0x575   : > { %3589 = vmatprep.subr.bf16.mxu0 %v3722_v16  ;;  %v2539_v17 = vld [vmem:[%s4557_s19 + $0x68] sm:$0xff] }
 0x576   : > { %v3689_v18 = vpack.c.bf16 %v2539_v17, %v2538_v15 }
 0x578   : > { %3591 = vmatpush3.bf16.msra.mxu0 %v3590_v23  ;;  %v2265_v23 = vld [vmem:[%s4551_s13 + $0x68] sm:$0xff] }
 0x579   : > { %3592 = vmatprep.subr.bf16.mxu0 %v3722_v16 }
 0x57c   : > { %3594 = vmatpush3.bf16.msra.mxu0 %v3593_v26  ;;  %v3641_v26 = vpack.c.bf16 %v2265_v23, %v2264_v22 }
 0x57d   : > { %3595 = vmatprep.subr.bf16.mxu0 %v3722_v16 }
 0x580   : > { %3597 = vmatpush3.bf16.msra.mxu0 %v3596_v29  ;;  %v2267_v29 = vld [vmem:[%s4551_s13 + $0x78] sm:$0xff] }
 0x581   : > { %3230 = vmatprep.subr.mxu0 %v3721_v12 }
 0x632   : > { %v1783_v30 = vpop.f32.mrb[8].mxu0 }
 0x633   : > { %v3162_v31 = vpop.f32.mrb[9].mxu0  ;;  %3204 = vmatmul.mubr.msk.f32.vlgmr.msra.gmra.mrb[8].mxu1 %vm853_vm5, %v1783_v30  ;;  %v2424_v30 = vld [vmem:[%s4553_s15] sm:$0xff] }
 0x634   : > { %3227 = vmatprep.mubr.msk.f32.mxu1 %vm3723_vm6, %v3721_v12  ;;  %v2425_v31 = vld [vmem:[%s4553_s15 + $0x8] sm:$0xff] }
 0x636   : > { %v1855_v32 = vpop.f32.mrb[10].mxu0 }
 0x637   : > { %v3167_v33 = vpop.f32.mrb[11].mxu0  ;;  %3223 = vmatmul.mubr.msk.f32.vlgmr.msra.gmra.mrb[14].mxu0 %vm853_vm5, %v1855_v32  ;;  %v3644_v32 = vpack.c.bf16 %v2267_v29, %v2266_v28 }
 0x638   : > { %3232 = vmatprep.mubr.msk.f32.mxu0 %vm3723_vm6, %v3721_v12  ;;  %v3647_v33 = vpack.c.bf16 %v2425_v31, %v2424_v30 }
 0x646   : > { %v1944_v34 = vpop.f32.mrb[12].mxu0 }
 0x647   : > { %v3186_v35 = vpop.f32.mrb[13].mxu0 }
 0x648   : > { %v2427_v35 = vld [vmem:[%s4553_s15 + $0x18] sm:$0xff] }
 0x706   : > { %v2017_v36 = vpop.f32.mrb[8].mxu1 }
 0x707   : > { %v2018_v37 = vadd.f32 %v2017_v36, %v1944_v34  ;;  %v3205_v38 = vpop.f32.mrb[9].mxu1  ;;  %v2426_v34 = vld [vmem:[%s4553_s15 + $0x10] sm:$0xff] }
 0x708   : > { %v3650_v36 = vpack.c.bf16 %v2427_v35, %v2426_v34  ;;  %v2429_v38 = vld [vmem:[%s4553_s15 + $0x28] sm:$0xff] }
 0x70a   : > { %v2098_v39 = vpop.f32.mrb[14].mxu0 }
 0x70b   : > { %v2102_v41 = vadd.f32 %v2098_v39, %v2018_v37  ;;  %v3224_v42 = vpop.f32.mrb[15].mxu0  ;;  %v2428_v37 = vld [vmem:[%s4553_s15 + $0x20] sm:$0xff] }
 0x70c   : > { %v3653_v39 = vpack.c.bf16 %v2429_v38, %v2428_v37 }
 0x70d   : > { %v2110_v45 = vadd.f32 %v2696_v40, %v2102_v41  ;;  %v2430_v40 = vld [vmem:[%s4553_s15 + $0x30] sm:$0xff]  ;;  %v2431_v41 = vld [vmem:[%s4553_s15 + $0x38] sm:$0xff] }
 0x70e   : > { %v3656_v42 = vpack.c.bf16 %v2431_v41, %v2430_v40 }
 0x70f   : > { %v4290_v46 = vmax.f32 %v2110_v45, 0.0  ;;  %v3659_v45 = vpack.c.bf16 %v2433_v44, %v2432_v43 }
 0x711   : > { %3226 = vmatpush3.msra.mxu1 %v4290_v46  ;;  %3231 = vmatpush3.msra.mxu0 %v4290_v46 }
 0x712   : > { %3228 = vmatmul.mubr.msk.f32.vlgmr.msra.gmra.mrb[10].mxu1 %vm1714_vm7, %v3855_v13  ;;  %3598 = vmatprep.subr.bf16.mxu1 %v3722_v16  ;;  %v2272_v13 = vld [vmem:[%s4552_s14 + $0x20] sm:$0xff] }
 0x713   : > { %3600 = vmatpush3.bf16.msra.mxu1 %v3599_v47  ;;  %3233 = vmatmul.mubr.msk.f32.vlgmr.msra.gmra.mrb[16].mxu0 %vm1714_vm7, %v3858_v14  ;;  %v3626_v14 = vpack.c.bf16 %v2255_v55, %v2254_v54  ;;  %v3605_v57 = vpack.c.bf16 %v2273_v56, %v2272_v13  ;;  %v2435_v47 = vld [vmem:[%s4553_s15 + $0x58] sm:$0xff]  ;;  %v2526_v55 = vld [vmem:[%s4557_s19] sm:$0xff]  ;;  %v2527_v13 = vld [vmem:[%s4557_s19 + $0x8] sm:$0xff] }
 0x714   : > { %3601 = vmatprep.subr.bf16.mxu1 %v3722_v16  ;;  %3267 = vmatprep.mubr.msk.f32.mxu1 %vm3723_vm6, %v3721_v12  ;;  %v3671_v56 = vpack.c.bf16 %v2527_v13, %v2526_v55 }
 0x715   : > { %3622 = vmatprep.subr.bf16.mxu0 %v3722_v16  ;;  %3302 = vmatprep.mubr.msk.f32.mxu0 %vm3723_vm6, %v3721_v12 }
 0x716   : > { %3624 = vmatpush3.bf16.msra.mxu0 %v3623_v52  ;;  %v2438_v52 = vld [vmem:[%s4553_s15 + $0x70] sm:$0xff] }
 0x717   : > { %3603 = vmatpush3.bf16.msra.mxu1 %v3602_v53  ;;  %3625 = vmatprep.subr.bf16.mxu0 %v3722_v16  ;;  %v2439_v53 = vld [vmem:[%s4553_s15 + $0x78] sm:$0xff] }
 0x718   : > { %3604 = vmatprep.subr.bf16.mxu1 %v3722_v16  ;;  %v3668_v54 = vpack.c.bf16 %v2439_v53, %v2438_v52 }
 0x71a   : > { %3627 = vmatpush3.bf16.msra.mxu0 %v3626_v14  ;;  %v2528_v14 = vld [vmem:[%s4557_s19 + $0x10] sm:$0xff] }
 0x71b   : > { %3606 = vmatpush3.bf16.msra.mxu1 %v3605_v57  ;;  %3628 = vmatprep.subr.bf16.mxu0 %v3722_v16  ;;  %v2529_v57 = vld [vmem:[%s4557_s19 + $0x18] sm:$0xff] }
 0x71c   : > { %3607 = vmatprep.subr.bf16.mxu1 %v3722_v16 }
 0x71e   : > { %3630 = vmatpush3.bf16.msra.mxu0 %v3629_v62  ;;  %v3674_v62 = vpack.c.bf16 %v2529_v57, %v2528_v14 }
 0x71f   : > { %3609 = vmatpush3.bf16.msra.mxu1 %v3608_v63  ;;  %3631 = vmatprep.subr.bf16.mxu0 %v3722_v16  ;;  %v2530_v63 = vld [vmem:[%s4557_s19 + $0x20] sm:$0xff] }
 0x720   : > { %3610 = vmatprep.subr.bf16.mxu1 %v3722_v16  ;;  %v3677_v1 = vpack.c.bf16 %v2531_v0, %v2530_v63 }
 0x722   : > { %3633 = vmatpush3.bf16.msra.mxu0 %v3632_v4  ;;  %v2532_v4 = vld [vmem:[%s4557_s19 + $0x30] sm:$0xff] }
 0x723   : > { %3612 = vmatpush3.bf16.msra.mxu1 %v3611_v5  ;;  %3634 = vmatprep.subr.bf16.mxu0 %v3722_v16  ;;  %v2533_v5 = vld [vmem:[%s4557_s19 + $0x38] sm:$0xff] }
 0x724   : > { %3613 = vmatprep.subr.bf16.mxu1 %v3722_v16  ;;  %v3680_v6 = vpack.c.bf16 %v2533_v5, %v2532_v4 }
 0x726   : > { %3636 = vmatpush3.bf16.msra.mxu0 %v3635_v10  ;;  %v2537_v10 = vld [vmem:[%s4557_s19 + $0x58] sm:$0xff] }
 0x727   : > { %3615 = vmatpush3.bf16.msra.mxu1 %v3614_v11  ;;  %3637 = vmatprep.subr.bf16.mxu0 %v3722_v16  ;;  %v3686_v11 = vpack.c.bf16 %v2537_v10, %v2536_v9 }
 0x728   : > { %3616 = vmatprep.subr.bf16.mxu1 %v3722_v16 }
 0x72a   : > { %3639 = vmatpush3.bf16.msra.mxu0 %v3638_v20  ;;  %v2541_v20 = vld [vmem:[%s4557_s19 + $0x78] sm:$0xff] }
 0x72b   : > { %3618 = vmatpush3.bf16.msra.mxu1 %v3617_v21  ;;  %3640 = vmatprep.subr.bf16.mxu0 %v3722_v16  ;;  %v3692_v21 = vpack.c.bf16 %v2541_v20, %v2540_v19 }
 0x72c   : > { %3619 = vmatprep.subr.bf16.mxu1 %v3722_v16 }
 0x72e   : > { %3642 = vmatpush3.bf16.msra.mxu0 %v3641_v26  ;;  %v2699_v26 = vld [vmem:[%s4554_s16] ss:$0 sm:$0xff] }
 0x72f   : > { %3621 = vmatpush3.bf16.msra.mxu1 %v3620_v27  ;;  %3643 = vmatprep.subr.bf16.mxu0 %v3722_v16 }
 0x730   : > { %3646 = vmatprep.subr.bf16.mxu1 %v3722_v16 }
 0x732   : > { %3268 = vmatmul.mubr.f32.vlgmr.msra.gmra.mrb[12].mxu1 %v4290_v46  ;;  %3645 = vmatpush3.bf16.msra.mxu0 %v3644_v32  ;;  %v2434_v46 = vld [vmem:[%s4553_s15 + $0x50] sm:$0xff] }
 0x733   : > { %3648 = vmatpush3.bf16.msra.mxu1 %v3647_v33  ;;  %3337 = vmatprep.mubr.msk.f32.mxu1 %vm3723_vm6, %v3721_v12  ;;  %v3662_v48 = vpack.c.bf16 %v2435_v47, %v2434_v46 }
 0x734   : > { %3649 = vmatprep.subr.bf16.mxu1 %v3722_v16  ;;  %3670 = vmatprep.subr.bf16.mxu0 %v3722_v16 }
 0x737   : > { %3651 = vmatpush3.bf16.msra.mxu1 %v3650_v36  ;;  %v2542_v36 = vld [vmem:[%s4558_s20] sm:$0x1] }
 0x738   : > { %3652 = vmatprep.subr.bf16.mxu1 %v3722_v16 }
 0x73b   : > { %3654 = vmatpush3.bf16.msra.mxu1 %v3653_v39 }
 0x73c   : > { %3655 = vmatprep.subr.bf16.mxu1 %v3722_v16 }
 0x73f   : > { %3657 = vmatpush3.bf16.msra.mxu1 %v3656_v42 }
 0x740   : > { %3658 = vmatprep.subr.bf16.mxu1 %v3722_v16 }
 0x743   : > { %3660 = vmatpush3.bf16.msra.mxu1 %v3659_v45 }
 0x744   : > { %3661 = vmatprep.subr.bf16.mxu1 %v3722_v16 }
 0x747   : > { %3663 = vmatpush3.bf16.msra.mxu1 %v3662_v48 }
 0x748   : > { %3664 = vmatprep.subr.bf16.mxu1 %v3722_v16 }
 0x74b   : > { %3666 = vmatpush3.bf16.msra.mxu1 %v3665_v51 }
 0x74c   : > { %3667 = vmatprep.subr.bf16.mxu1 %v3722_v16 }
 0x74f   : > { %3669 = vmatpush3.bf16.msra.mxu1 %v3668_v54 }
 0x7e5   : > { %v2178_v58 = vpop.f32.mrb[10].mxu1 }
 0x7e6   : > { %3303 = vmatmul.mubr.f32.vlgmr.msra.gmra.mrb[18].mxu0 %v2178_v58  ;;  %v2248_v59 = vpop.f32.mrb[16].mxu0  ;;  %v3229_v60 = vpop.f32.mrb[11].mxu1 }
 0x7e7   : > { %3338 = vmatmul.mubr.f32.vlgmr.msra.gmra.mrb[14].mxu1 %v2248_v59  ;;  %v3234_v61 = vpop.f32.mrb[17].mxu0  ;;  %3672 = vmatpush3.bf16.msra.mxu0 %v3671_v56 }
 0x7e8   : > { %3673 = vmatprep.subr.bf16.mxu0 %v3722_v16  ;;  %3372 = vmatprep.mubr.msk.f32.mxu0 %vm3723_vm6, %v3721_v12  ;;  %v2534_v12 = vld [vmem:[%s4557_s19 + $0x40] sm:$0xff] }
 0x7e9   : > { %v3683_v8 = vpack.c.bf16 %v2535_v7, %v2534_v12 }
 0x7eb   : > { %3675 = vmatpush3.bf16.msra.mxu0 %v3674_v62 }
 0x7ec   : > { %3676 = vmatprep.subr.bf16.mxu0 %v3722_v16 }
 0x7ef   : > { %3678 = vmatpush3.bf16.msra.mxu0 %v3677_v1 }
 0x7f0   : > { %3679 = vmatprep.subr.bf16.mxu0 %v3722_v16 }
 0x7f3   : > { %3681 = vmatpush3.bf16.msra.mxu0 %v3680_v6 }
 0x7f4   : > { %3682 = vmatprep.subr.bf16.mxu0 %v3722_v16 }
 0x7f7   : > { %3684 = vmatpush3.bf16.msra.mxu0 %v3683_v8 }
 0x7f8   : > { %3685 = vmatprep.subr.bf16.mxu0 %v3722_v16 }
 0x7fb   : > { %3687 = vmatpush3.bf16.msra.mxu0 %v3686_v11 }
 0x7fc   : > { %3688 = vmatprep.subr.bf16.mxu0 %v3722_v16 }
 0x7ff   : > { %3690 = vmatpush3.bf16.msra.mxu0 %v3689_v18 }
 0x800   : > { %3691 = vmatprep.subr.bf16.mxu0 %v3722_v16 }
 0x803   : > { %3693 = vmatpush3.bf16.msra.mxu0 %v3692_v21 }
 0x805   : > { %v2350_v2 = vpop.f32.mrb[12].mxu1 }
 0x806   : > { %v3269_v3 = vpop.f32.mrb[13].mxu1 }
 0x8b9   : > { %v2420_v22 = vpop.f32.mrb[18].mxu0 }
 0x8ba   : > { %v2421_v23 = vadd.f32 %v2420_v22, %v2350_v2  ;;  %v2506_v24 = vpop.f32.mrb[14].mxu1  ;;  %v3304_v25 = vpop.f32.mrb[19].mxu0 }
 0x8bb   : > { %v3339_v16 = vpop.f32.mrb[15].mxu1 }
 0x8bc   : > { %v2510_v27 = vadd.f32 %v2506_v24, %v2421_v23 }
 0x8be   : > { %v2518_v28 = vadd.f32 %v2699_v26, %v2510_v27 }
 0x8c0   : > { %v2519_v29 = vmax.f32 %v2518_v28, 0.0 }
 0x8c2   : > { %v2520_v30 = vrot.slane %v2519_v29, 4 }
 0x8c4   : > { %v2521_v31 = vadd.f32 %v2520_v30, %v2519_v29 }
 0x8c6   : > { %v2522_v32 = vrot.slane %v2521_v31, 2 }
 0x8c8   : > { %v2523_v33 = vadd.f32 %v2522_v32, %v2521_v31 }
 0x8ca   : > { %v2524_v34 = vrot.slane %v2523_v33, 1 }
 0x8cc   : > { %v2525_v35 = vadd.f32 %v2524_v34, %v2523_v33 }
 0x8ce   : > { %3373 = vmatmul.mubr.f32.vlgmr.msra.gmra.mrb[20].mxu0 %v2525_v35 }
 0x9a1   : > { %v2609_v37 = vpop.f32.mrb[20].mxu0 }
 0x9a2   : > { %v2610_v38 = vadd.f32 %v2609_v37, %v2542_v36  ;;  %v3374_v39 = vpop.f32.mrb[21].mxu0 }
 0x9a4   : > { %2614 = vst.msk [vmem:[%s652_s0] sm:$0x1] %vm2613_vm8, %v2610_v38 }
 0x9a5 PF: > { %s31_s2 = sadd.s32 1, %s3719_s2  }
 0x9a6   : > { %p28_p4 = scmp.ge.s32.totalorder %s31_s2, 4  }
 0x9a8   :  { %30 = sbr.rel (!%p28_p4) target bundleno = 7 (0x7), region = 134 }

</bundles_post_ra>
